<compile_context>
chip_gen: v5e
topology: v5e:2x2
jax: 0.10.0
libtpu: 0.0.40
codegen_flags: <defaults>
</compile_context>

<pallas_src>
import functools

import jax
import jax.numpy as jnp
from jax.experimental import pallas as pl
from jax.experimental.pallas import tpu as pltpu

P_DROP = 0.1          # dropout probability from SublayerConnection(size, dropout)
LN_EPS = 1e-5         # nn.LayerNorm default eps


def _sublayer_connection_kernel(seed_ref,                         # scalar-prefetch (SMEM)
                                x_ref, w_ref, b_ref, g_ref, beta_ref,  # inputs
                                o_ref,                             # output
                                *, p_drop, tm, hidden):
    # ----- sublayer(x): Linear(H, H) on the MXU (bf16 operands, f32 acc) -----
    x = x_ref[...]                                                 # (TM, H) f32
    y = jnp.dot(x.astype(jnp.bfloat16), w_ref[...],                # w is bf16
                preferred_element_type=jnp.float32)                # (TM, H) f32
    y = y + b_ref[...]                                             # broadcast (1, H)

    # ----- Dropout(p): inverted dropout, training semantics -----
    if p_drop > 0.0:
        # Stateless counter-based PRNG: unique global element index mixed with
        # the seed through a 32-bit integer hash (lowbias32). Per-tile
        # decorrelation comes from folding the global row index in.
        pid = pl.program_id(0)
        row = jax.lax.broadcasted_iota(jnp.uint32, (tm, hidden), 0)
        col = jax.lax.broadcasted_iota(jnp.uint32, (tm, hidden), 1)
        grow = (pid * tm).astype(jnp.uint32) + row                 # global row id
        gid = grow * jnp.uint32(hidden) + col                      # global element id
        h = gid ^ (seed_ref[0].astype(jnp.uint32) * jnp.uint32(0x9E3779B9))
        h = h ^ (h >> 16)
        h = h * jnp.uint32(0x7FEB352D)
        h = h ^ (h >> 15)
        h = h * jnp.uint32(0x846CA68B)
        h = h ^ (h >> 16)
        thresh = jnp.uint32(int(p_drop * (1 << 24)))               # static
        keep = (h >> 8) >= thresh                                  # P(keep) = 1 - p
        y = jnp.where(keep, y * (1.0 / (1.0 - p_drop)), 0.0)

    # ----- residual connection -----
    z = x + y                                                      # (TM, H) f32

    # ----- LayerNorm over the last (hidden) dim: fused mean/var pass -----
    inv_h = 1.0 / hidden
    s = jnp.sum(z, axis=-1, keepdims=True)
    ss = jnp.sum(z * z, axis=-1, keepdims=True)
    mean = s * inv_h
    var = jnp.maximum(ss * inv_h - mean * mean, 0.0)               # biased var (PyTorch LN)
    inv = jax.lax.rsqrt(var + LN_EPS)
    out = g_ref[...] * ((z - mean) * inv) + beta_ref[...]

    o_ref[...] = out.astype(o_ref.dtype)


def sublayer_connection(x, w, b, gamma, beta, seed, p_drop=P_DROP, tm=512):
    """x: (B, S, H) float32. Returns LayerNorm(x + Dropout(x @ w + b))."""
    B, S, H = x.shape
    N = B * S
    x2 = x.reshape(N, H)

    # Row-tile size: multiple of 8 sublanes, or the full row count if small.
    if N <= tm:
        tm = N
    else:
        tm = max(8, (tm // 8) * 8)
    grid = (pl.cdiv(N, tm),)

    # Weights go to the MXU in bf16 (halves resident VMEM footprint too);
    # bias / gamma / beta stay f32 for the element-wise epilogue.
    w_bf16 = w.astype(jnp.bfloat16)

    # VMEM budget: double-buffered x + out tiles, resident bf16 weight, params.
    itemsize = jnp.dtype(x.dtype).itemsize
    vmem_bytes = (2 * tm * H * itemsize          # x, double buffered
                  + 2 * tm * H * itemsize        # out, double buffered
                  + H * H * 2                    # bf16 weight, resident
                  + 3 * H * 4)                   # bias / gamma / beta
    vmem_limit = int(min(max(2 * vmem_bytes, 32 * 1024 * 1024),
                         64 * 1024 * 1024))      # headroom, capped for v7x's 64 MiB

    kernel = functools.partial(_sublayer_connection_kernel,
                               p_drop=p_drop, tm=tm, hidden=H)

    out = pl.pallas_call(
        kernel,
        out_shape=jax.ShapeDtypeStruct((N, H), x.dtype),
        grid_spec=pltpu.PrefetchScalarGridSpec(
            num_scalar_prefetch=1,
            grid=grid,
            in_specs=[
                pl.BlockSpec((tm, H), lambda i, s: (i, 0)),   # x: row tiles
                pl.BlockSpec((H, H), lambda i, s: (0, 0)),    # W: resident
                pl.BlockSpec((1, H), lambda i, s: (0, 0)),    # bias: resident
                pl.BlockSpec((1, H), lambda i, s: (0, 0)),    # gamma: resident
                pl.BlockSpec((1, H), lambda i, s: (0, 0)),    # beta: resident
            ],
            out_specs=pl.BlockSpec((tm, H), lambda i, s: (i, 0)),
        ),
        compiler_params=pltpu.CompilerParams(
            dimension_semantics=("parallel",),   # shard row tiles across TCs (v7x)
            vmem_limit_bytes=vmem_limit),
    )(jnp.asarray([seed], dtype=jnp.int32),
      x2, w_bf16, b.reshape(1, H), gamma.reshape(1, H), beta.reshape(1, H))

    return out.reshape(B, S, H)


if __name__ == "__main__":
    # Small shapes; H aligned to the 128-lane vreg, N=256 rows -> 2 row tiles
    # with tm=128 so the tiled / per-tile-PRNG path is actually exercised.
    B, S, H = 4, 64, 128

    key = jax.random.PRNGKey(0)
    kx, kw = jax.random.split(key)

    # deterministic inputs / parameters (synthetic init, no checkpoint load)
    x = jax.random.normal(kx, (B, S, H), dtype=jnp.float32)
    w = jax.random.normal(kw, (H, H), dtype=jnp.float32) * (1.0 / jnp.sqrt(H))
    b = jnp.zeros((H,), jnp.float32)
    gamma = jnp.ones((H,), jnp.float32)    # nn.LayerNorm weight init
    beta = jnp.zeros((H,), jnp.float32)    # nn.LayerNorm bias init

    out = sublayer_connection(x, w, b, gamma, beta, seed=1234, tm=128)
    jax.block_until_ready(out)

    assert out.shape == (B, S, H) and out.dtype == jnp.float32
    assert bool(jnp.all(jnp.isfinite(out)))
    print("KERNEL_OK")
</pallas_src>

<mosaic_0001>
module attributes {stable_mosaic.version = 11 : i64} {
  func.func @_sublayer_connection_kernel(%arg0: i32, %arg1: memref<1xi32, #tpu.memory_space<smem>>, %arg2: memref<128x128xf32, #tpu.memory_space<vmem>>, %arg3: memref<128x128xbf16, #tpu.memory_space<vmem>>, %arg4: memref<1x128xf32, #tpu.memory_space<vmem>>, %arg5: memref<1x128xf32, #tpu.memory_space<vmem>>, %arg6: memref<1x128xf32, #tpu.memory_space<vmem>>, %arg7: memref<128x128xf32, #tpu.memory_space<vmem>>) attributes {dimension_semantics = [#tpu.dimension_semantics<parallel>], iteration_bounds = array<i64: 2>, scalar_prefetch = 1 : i64, scratch_operands = 0 : i64, tpu.core_type = #tpu.core_type<tc>, window_params = [{transform_indices = @transform_0, window_bounds = array<i64: 128, 128>}, {pipeline_mode = #tpu.pipeline_mode<synchronous>, transform_indices = @transform_1, window_bounds = array<i64: 128, 128>}, {pipeline_mode = #tpu.pipeline_mode<synchronous>, transform_indices = @transform_2, window_bounds = array<i64: 1, 128>}, {pipeline_mode = #tpu.pipeline_mode<synchronous>, transform_indices = @transform_3, window_bounds = array<i64: 1, 128>}, {pipeline_mode = #tpu.pipeline_mode<synchronous>, transform_indices = @transform_4, window_bounds = array<i64: 1, 128>}, {transform_indices = @transform_5, window_bounds = array<i64: 128, 128>}]} {
    %c0 = arith.constant 0 : index
    %c0_0 = arith.constant 0 : index
    %0 = vector.load %arg2[%c0, %c0_0] : memref<128x128xf32, #tpu.memory_space<vmem>>, vector<128x128xf32>
    %1 = arith.truncf %0 : vector<128x128xf32> to vector<128x128xbf16>
    %c0_1 = arith.constant 0 : index
    %c0_2 = arith.constant 0 : index
    %2 = vector.load %arg3[%c0_1, %c0_2] : memref<128x128xbf16, #tpu.memory_space<vmem>>, vector<128x128xbf16>
    %cst = arith.constant dense<0.000000e+00> : vector<128x128xf32>
    %3 = tpu.matmul %1, %2, %cst {dimension_numbers = #tpu.dot_dimension_numbers<[1], [0], [0], [1], [0, 0, 1, 1], [], []>} : vector<128x128xbf16>, vector<128x128xbf16>, vector<128x128xf32> -> vector<128x128xf32>
    %c0_3 = arith.constant 0 : index
    %c0_4 = arith.constant 0 : index
    %4 = vector.load %arg4[%c0_3, %c0_4] : memref<1x128xf32, #tpu.memory_space<vmem>>, vector<1x128xf32>
    %5 = vector.broadcast %4 : vector<1x128xf32> to vector<128x128xf32>
    %6 = arith.addf %3, %5 : vector<128x128xf32>
    %7 = tpu.iota {dimensions = array<i32: 0>} : vector<128x128xi32>
    %8 = tpu.iota {dimensions = array<i32: 1>} : vector<128x128xi32>
    %c128_i32 = arith.constant 128 : i32
    %9 = arith.muli %arg0, %c128_i32 : i32
    %10 = vector.broadcast %9 : i32 to vector<128x128xi32>
    %11 = arith.addi %10, %7 : vector<128x128xi32>
    %c128_i32_5 = arith.constant 128 : i32
    %12 = vector.broadcast %c128_i32_5 : i32 to vector<128x128xi32>
    %13 = arith.muli %11, %12 : vector<128x128xi32>
    %14 = arith.addi %13, %8 : vector<128x128xi32>
    %c0_6 = arith.constant 0 : index
    %15 = memref.load %arg1[%c0_6] : memref<1xi32, #tpu.memory_space<smem>>
    %c-1640531527_i32 = arith.constant -1640531527 : i32
    %16 = arith.muli %15, %c-1640531527_i32 : i32
    %17 = vector.broadcast %16 : i32 to vector<128x128xi32>
    %18 = arith.xori %14, %17 : vector<128x128xi32>
    %c16_i32 = arith.constant 16 : i32
    %19 = vector.broadcast %c16_i32 : i32 to vector<128x128xi32>
    %20 = arith.shrui %18, %19 : vector<128x128xi32>
    %21 = arith.xori %18, %20 : vector<128x128xi32>
    %c2146121005_i32 = arith.constant 2146121005 : i32
    %22 = vector.broadcast %c2146121005_i32 : i32 to vector<128x128xi32>
    %23 = arith.muli %21, %22 : vector<128x128xi32>
    %c15_i32 = arith.constant 15 : i32
    %24 = vector.broadcast %c15_i32 : i32 to vector<128x128xi32>
    %25 = arith.shrui %23, %24 : vector<128x128xi32>
    %26 = arith.xori %23, %25 : vector<128x128xi32>
    %c-2073254261_i32 = arith.constant -2073254261 : i32
    %27 = vector.broadcast %c-2073254261_i32 : i32 to vector<128x128xi32>
    %28 = arith.muli %26, %27 : vector<128x128xi32>
    %c16_i32_7 = arith.constant 16 : i32
    %29 = vector.broadcast %c16_i32_7 : i32 to vector<128x128xi32>
    %30 = arith.shrui %28, %29 : vector<128x128xi32>
    %31 = arith.xori %28, %30 : vector<128x128xi32>
    %c8_i32 = arith.constant 8 : i32
    %32 = vector.broadcast %c8_i32 : i32 to vector<128x128xi32>
    %33 = arith.shrui %31, %32 : vector<128x128xi32>
    %c1677721_i32 = arith.constant 1677721 : i32
    %34 = vector.broadcast %c1677721_i32 : i32 to vector<128x128xi32>
    %35 = arith.cmpi uge, %33, %34 : vector<128x128xi32>
    %cst_8 = arith.constant 1.11111116 : f32
    %36 = vector.broadcast %cst_8 : f32 to vector<128x128xf32>
    %37 = arith.mulf %6, %36 : vector<128x128xf32>
    %cst_9 = arith.constant 0.000000e+00 : f32
    %38 = vector.broadcast %cst_9 : f32 to vector<128x128xf32>
    %39 = arith.select %35, %37, %38 : vector<128x128xi1>, vector<128x128xf32>
    %40 = arith.addf %0, %39 : vector<128x128xf32>
    %cst_10 = arith.constant dense<0.000000e+00> : vector<128xf32>
    %41 = vector.multi_reduction <add>, %40, %cst_10 [1] : vector<128x128xf32> to vector<128xf32>
    %42 = vector.shape_cast %41 : vector<128xf32> to vector<128x1xf32>
    %43 = arith.mulf %40, %40 : vector<128x128xf32>
    %cst_11 = arith.constant dense<0.000000e+00> : vector<128xf32>
    %44 = vector.multi_reduction <add>, %43, %cst_11 [1] : vector<128x128xf32> to vector<128xf32>
    %45 = vector.shape_cast %44 : vector<128xf32> to vector<128x1xf32>
    %cst_12 = arith.constant 7.812500e-03 : f32
    %46 = vector.broadcast %cst_12 : f32 to vector<128x1xf32>
    %47 = arith.mulf %42, %46 : vector<128x1xf32>
    %cst_13 = arith.constant 7.812500e-03 : f32
    %48 = vector.broadcast %cst_13 : f32 to vector<128x1xf32>
    %49 = arith.mulf %45, %48 : vector<128x1xf32>
    %50 = arith.mulf %47, %47 : vector<128x1xf32>
    %51 = arith.subf %49, %50 : vector<128x1xf32>
    %cst_14 = arith.constant 0.000000e+00 : f32
    %52 = vector.broadcast %cst_14 : f32 to vector<128x1xf32>
    %53 = arith.maximumf %51, %52 : vector<128x1xf32>
    %cst_15 = arith.constant 9.99999974E-6 : f32
    %54 = vector.broadcast %cst_15 : f32 to vector<128x1xf32>
    %55 = arith.addf %53, %54 : vector<128x1xf32>
    %56 = math.rsqrt %55 : vector<128x1xf32>
    %c0_16 = arith.constant 0 : index
    %c0_17 = arith.constant 0 : index
    %57 = vector.load %arg5[%c0_16, %c0_17] : memref<1x128xf32, #tpu.memory_space<vmem>>, vector<1x128xf32>
    %58 = vector.broadcast %47 : vector<128x1xf32> to vector<128x128xf32>
    %59 = arith.subf %40, %58 : vector<128x128xf32>
    %60 = vector.broadcast %56 : vector<128x1xf32> to vector<128x128xf32>
    %61 = arith.mulf %59, %60 : vector<128x128xf32>
    %62 = vector.broadcast %57 : vector<1x128xf32> to vector<128x128xf32>
    %63 = arith.mulf %62, %61 : vector<128x128xf32>
    %c0_18 = arith.constant 0 : index
    %c0_19 = arith.constant 0 : index
    %64 = vector.load %arg6[%c0_18, %c0_19] : memref<1x128xf32, #tpu.memory_space<vmem>>, vector<1x128xf32>
    %65 = vector.broadcast %64 : vector<1x128xf32> to vector<128x128xf32>
    %66 = arith.addf %63, %65 : vector<128x128xf32>
    %c0_20 = arith.constant 0 : index
    %c0_21 = arith.constant 0 : index
    %67 = vector.load %arg7[%c0_20, %c0_21] : memref<128x128xf32, #tpu.memory_space<vmem>>, vector<128x128xf32>
    tpu.vector_store %arg7[%c0_20, %c0_21], %66 {strides = array<i32>} : memref<128x128xf32, #tpu.memory_space<vmem>>, vector<128x128xf32>,
    return
  }
  func.func @transform_0(%arg0: i32, %arg1: memref<1xi32, #tpu.memory_space<smem>>) -> (i32, i32) {
    %c0_i32 = arith.constant 0 : i32
    %c0_i32_0 = arith.constant 0 : i32
    return %arg0, %c0_i32 : i32, i32
  }
  func.func @transform_1(%arg0: i32, %arg1: memref<1xi32, #tpu.memory_space<smem>>) -> (i32, i32) {
    %c0_i32 = arith.constant 0 : i32
    %c0_i32_0 = arith.constant 0 : i32
    %c0_i32_1 = arith.constant 0 : i32
    return %c0_i32, %c0_i32_0 : i32, i32
  }
  func.func @transform_2(%arg0: i32, %arg1: memref<1xi32, #tpu.memory_space<smem>>) -> (i32, i32) {
    %c0_i32 = arith.constant 0 : i32
    %c0_i32_0 = arith.constant 0 : i32
    %c0_i32_1 = arith.constant 0 : i32
    return %c0_i32, %c0_i32_0 : i32, i32
  }
  func.func @transform_3(%arg0: i32, %arg1: memref<1xi32, #tpu.memory_space<smem>>) -> (i32, i32) {
    %c0_i32 = arith.constant 0 : i32
    %c0_i32_0 = arith.constant 0 : i32
    %c0_i32_1 = arith.constant 0 : i32
    return %c0_i32, %c0_i32_0 : i32, i32
  }
  func.func @transform_4(%arg0: i32, %arg1: memref<1xi32, #tpu.memory_space<smem>>) -> (i32, i32) {
    %c0_i32 = arith.constant 0 : i32
    %c0_i32_0 = arith.constant 0 : i32
    %c0_i32_1 = arith.constant 0 : i32
    return %c0_i32, %c0_i32_0 : i32, i32
  }
  func.func @transform_5(%arg0: i32, %arg1: memref<1xi32, #tpu.memory_space<smem>>) -> (i32, i32) {
    %c0_i32 = arith.constant 0 : i32
    %c0_i32_0 = arith.constant 0 : i32
    return %arg0, %c0_i32 : i32, i32
  }
}

</mosaic_0001>

<bundles_post_ra>
// kernel: tpu_custom_call.1
= control target key start
LH: loop header
LB: loop body
LE: loop exit
PB: predicated region body
PF: predicated region fallthrough
CT: control target
= control target key end

     0   :  { %s2287_s0 = inlined_call_operand.<no memory space> [shape: s32[1], index: 0, kind: input, shape index: {}]   ;;  %s2288_s1 = inlined_call_operand.hbm [shape: f32[256,128], index: 1, kind: input, shape index: {}]   ;;  %s2289_s2 = inlined_call_operand.hbm [shape: bf16[128,128], index: 2, kind: input, shape index: {}]   ;;  %s2290_s3 = inlined_call_operand.vmem [shape: f32[1,128], index: 3, kind: input, shape index: {}]   ;;  %s2291_s4 = inlined_call_operand.vmem [shape: f32[1,128], index: 4, kind: input, shape index: {}]   ;;  %s2292_s5 = inlined_call_operand.vmem [shape: f32[1,128], index: 5, kind: input, shape index: {}]   ;;  %s2293_s6 = inlined_call_operand.hbm [shape: f32[256,128], index: 6, kind: output, shape index: {}]  }
   0x1   :  { %11 = sst [smem:[#allocation3]] %s2287_s0 }
   0x2   :  { %12 = vsyncpa [#allocation5], 0 }
   0x3   :  { %14 = vsyncpa [#allocation5 + $0x1], 0 }
   0x4   :  { %15 = vsyncpa [#allocation8], 0 }
   0x5   :  { %16 = vsyncpa [#allocation6], 0 }
   0x6   :  { %18 = vsyncpa [#allocation6 + $0x1], 0  ;;  %s1632_s23 = smov 0   ;;  %s1634_s24 = smov 0  }
   0x7   :  { %s1636_s25 = smov 0   ;;  %s1638_s26 = smov 0  }
   0x8 LB: > { %s1653_s0 = sadd.s32 4294967295, %s1585_s26   ;;  %s1258_s27 = sadd.s32 4294967294, %s1585_s26   ;;  %s1585_s26 = sphi %s1638_s26, %s2303_s26   ;;  %s1581_s25 = sphi %s1636_s25, %s2302_s25   ;;  %s1577_s24 = sphi %s1634_s24, %s2301_s24   ;;  %s1573_s23 = sphi %s1632_s23, %s2300_s23  }
   0x9   : > { %p44_p0 = scmp.ne.s32.totalorder %s1577_s24, %s1573_s23  ;;  %p45_p1 = scmp.eq.s32.totalorder %s1653_s0, 0 }
   0xa   : > { %p152_p2 = scmp.eq.s32.totalorder %s1653_s0, 1  ;;  %p158_p3 = scmp.eq.s32.totalorder %s1258_s27, 1 }
   0xb   : > { %p1662_p4 = por %p45_p1, %p44_p0  ;;  %p1259_p5 = scmp.ge.s32.totalorder %s1585_s26, 1 }
   0xc   : > { %p1667_p6 = por %p158_p3, %p44_p0  ;;  %p165_p7 = scmp.lt.s32.totalorder %s1585_s26, 3 }
   0xd   : > { %s176_s8 = sshll.u32 %s2289_s2, 4  ;;  %s1587_s10 = smov [#allocation7]   ;;  %s177_s8 = int_to_ptr.hbm [resolvable:$true] %s176_s8 }
   0xe   : > { %p1675_p8 = pnand %p1259_p5, %p165_p7  ;;  %s178_s11 = sshll.u32 %s1587_s10, 4  ;;  %s179_s11 = int_to_ptr.vmem [resolvable:$true] %s178_s11 }
   0xf   : > { %s1685_s12 = sadd.s32 1, %s1585_s26   ;;  %s1588_s13 = smov 64  }
  0x10   : > { %p1365_p9 = pneg %p1675_p8  ;;  %s1589_s14 = smov 4  }
  0x11   : > { %s28_s15 = ssub.s32 %s1585_s26, %s1685_s12  ;;  %s31_s16 = sadd.s32 1, %s1581_s25 }
  0x12   : > { %p1366_p10 = pnand %p1365_p9, %p45_p1  ;;  %p29_p12 = scmp.eq.s32.totalorder %s28_s15, 0 }
  0x13   : > { %p38_p13 = scmp.ne.s32.totalorder %s1581_s25, %s1577_s24  ;;  %p39_p0 = scmp.eq.s32.totalorder %s1585_s26, 0 }
  0x14   : > { %1368 = dma.hbm_to_vmem [thread:$0]  (!%p1366_p10), %s177_s8, 1024, %s179_s11, [#allocation8], %s1588_s13, %s1588_s13, %s1589_s14  }
  0x15   : > { %p1378_p3 = scmp.lt.s32.totalorder %s1585_s26, 2  ;;  %p40_p5 = por %p39_p0, %p38_p13 }
  0x16   : > { %s1695_s17 = scalar_select %p29_p12, %s1581_s25, %s31_s16  }
  0x17   : > { %p1699_p7 = por %p152_p2, %p38_p13  ;;  %s201_s19 = sand.u32 1, %s1581_s25  }
  0x18   : > { %s1323_s20 = sshll.u32 %s1585_s26, 7  ;;  %s1262_s21 = sshll.u32 %s201_s19, 7 }
  0x19   : > { %s210_s30 = scalar_lea.hbm %s2288_s1, %s1323_s20  ;;  %s205_s8 = scalar_lea.vmem [#allocation4], %s1262_s21 }
  0x1a   : > { %s211_s7 = sshll.u32 %s210_s30, 4  ;;  %s213_s10 = sshll.u32 %s205_s8, 4  ;;  %s212_s7 = int_to_ptr.hbm [resolvable:$true] %s211_s7  ;;  %s214_s10 = int_to_ptr.vmem [resolvable:$true] %s213_s10 }
  0x1b   : > { %p1710_p9 = pnand %p1378_p3, %p40_p5  ;;  %s202_s13 = scalar_lea.sflag [#allocation5], %s201_s19 }
  0x1c   : > { %s1485_s14 = sshra.s32 %s212_s7, 4  ;;  %s1492_s21 = scalar_lea.hbm %s2288_s1, 256  ;;  %s1486_s14 = int_to_ptr.hbm [resolvable:$true] %s1485_s14 }
  0x1d   : > { %s1487_s15 = scalar_lea.hbm %s1486_s14, 128  ;;  %p1489_p10 = pneg %p1710_p9 }
  0x1e   : > { %p1488_p2 = scmp.ne.s32.totalorder %s1486_s14, %s1487_s15  ;;  %p1493_p0 = scmp.lt.s32.totalorder %s1486_s14, %s2288_s1 }
  0x1f   : > { %p1494_p3 = scmp.lt.s32.totalorder %s1492_s21, %s1487_s15 }
  0x20   : > { %p1490_p12 = pnand %p1489_p10, %p1488_p2 }
  0x21   : > { %p1495_p5 = por %p1494_p3, %p1493_p0 }
  0x22   : > { %p1491_p13 = pneg %p1490_p12 }
  0x24   : > { %p1496_p11 = pnand %p1495_p5, %p1491_p13 }
  0x26   : > { %1499 = shalt.err (!%p1496_p11)
}
  0x27   : > { %s1590_s19 = smov 128   ;;  %s1591_s30 = smov 8  }
  0x28   : > { %1372 = dma.hbm_to_vmem [thread:$0]  (!%p1710_p9), %s212_s7, 2048, %s214_s10, %s202_s13, %s1590_s19, %s1590_s19, %s1591_s30  }
  0x29   : > { %225 = sbr.rel (%p1675_p8) target bundleno = 448 (0x1c0), region = 40  ;;  %s1727_s8 = sand.u32 (!%p1675_p8), 1, %s1577_s24  }
  0x2a   : > { %s1266_s14 = sshll.u32 (!%p1675_p8), %s1727_s8, 7  ;;  %s228_s15 = scalar_lea.sflag (!%p1675_p8), [#allocation5], %s1727_s8 }
  0x2b   : > { %s1733_s16 = scalar_lea.vmem (!%p1675_p8), [#allocation4], %s1266_s14 }
  0x2e   : > { %1560 = dma.done.wait (%p1662_p4), %s228_s15, 2048  }
  0x2f   : > { %1562 = vsyncadd (%p1662_p4), %s228_s15, 4294965248 }
  0x30   : > { %1564 = dma.done.wait (%p45_p1), [#allocation8], 1024  }
  0x31   : > { %1566 = vsyncadd (%p45_p1), [#allocation8], 4294966272  ;;  %v1331_v0 = vld [vmem:[#allocation7 + $0x38] sm:$0xff]  ;;  %v1330_v1 = vld [vmem:[#allocation7 + $0x30] sm:$0xff]  ;;  %s476_s28 = sld [smem:[#allocation3]]  ;;  %v407_v32 = vlaneseq  ;;  %s1301_s9 = sshll.u32 %s1653_s0, 7 }
  0x32   : > { %358 = vmatpush.bf16.msra.mxu0 %v1331_v0  ;;  %1333 = vmatpush.bf16.msra.mxu1 %v1331_v0  ;;  %v1329_v2 = vld [vmem:[#allocation7 + $0x28] sm:$0xff]  ;;  %v1328_v3 = vld [vmem:[#allocation7 + $0x20] sm:$0xff]  ;;  %v1327_v4 = vld [vmem:[#allocation7 + $0x18] sm:$0xff]  ;;  %v1813_v35 = vstv %s1301_s9  ;;  %s2069_s27 = scalar_lea.vmem [#allocation9], %s1266_s14  ;;  %s1171_s14 = scalar_lea.hbm %s2293_s6, %s1301_s9 }
  0x33   : > { %1335 = vmatpush.bf16.msra.mxu3 %v1331_v0  ;;  %1334 = vmatpush.bf16.msra.mxu2 %v1331_v0  ;;  %v1326_v5 = vld [vmem:[#allocation7 + $0x10] sm:$0xff]  ;;  %v1325_v6 = vld [vmem:[#allocation7 + $0x8] sm:$0xff]  ;;  %v1324_v7 = vld [vmem:[#allocation7] sm:$0xff]  ;;  %v1807_v33 = vshrl.u32 %v407_v32, 7  ;;  %v1818_v38 = vand.u32 127, %v407_v32  ;;  %s1174_s0 = sshll.u32 %s1171_s14, 4  ;;  %s1175_s0 = int_to_ptr.hbm [resolvable:$true] %s1174_s0 }
  0x34   : > { %v1744_v8 = vld [vmem:[%s1733_s16] sm:$0xff]  ;;  %v1747_v9 = vld [vmem:[%s1733_s16 + $0x8] sm:$0xff]  ;;  %v1776_v20 = vld [vmem:[%s1733_s16 + $0x10] sm:$0xff]  ;;  %s1172_s15 = sshll.u32 %s2069_s27, 4  ;;  %s1535_s11 = scalar_lea.hbm %s2293_s6, 256  ;;  %s1173_s15 = int_to_ptr.vmem [resolvable:$true] %s1172_s15 }
  0x35   : > { %v1750_v10 = vld [vmem:[%s1733_s16 + $0x20] sm:$0xff]  ;;  %v1753_v11 = vld [vmem:[%s1733_s16 + $0x28] sm:$0xff]  ;;  %v282_v16 = vpack.c.bf16 %v1747_v9, %v1744_v8  ;;  %v1779_v21 = vld [vmem:[%s1733_s16 + $0x18] sm:$0xff]  ;;  %v412_v34 = vadd.s32 32, %v1807_v33  ;;  %v428_v36 = vadd.s32 %v1813_v35, %v1807_v33  ;;  %v420_v45 = vadd.s32 96, %v1807_v33 }
  0x36   : > { %359 = vmatpush.bf16.msra.mxu0 %v1330_v1  ;;  %1336 = vmatpush.bf16.msra.mxu1 %v1330_v1  ;;  %v1756_v12 = vld [vmem:[%s1733_s16 + $0x60] sm:$0xff]  ;;  %v1759_v13 = vld [vmem:[%s1733_s16 + $0x68] sm:$0xff]  ;;  %v284_v17 = vpack.c.bf16 %v1753_v11, %v1750_v10  ;;  %v1782_v22 = vld [vmem:[%s1733_s16 + $0x30] sm:$0xff]  ;;  %v283_v28 = vpack.c.bf16 %v1779_v21, %v1776_v20  ;;  %v409_v46 = vadd.s32 8, %v1807_v33  ;;  %v413_v51 = vadd.s32 40, %v1807_v33 }
  0x37   : > { %1338 = vmatpush.bf16.msra.mxu3 %v1330_v1  ;;  %1337 = vmatpush.bf16.msra.mxu2 %v1330_v1  ;;  %v1762_v14 = vld [vmem:[%s1733_s16 + $0x40] sm:$0xff]  ;;  %v1765_v15 = vld [vmem:[%s1733_s16 + $0x48] sm:$0xff]  ;;  %v288_v18 = vpack.c.bf16 %v1759_v13, %v1756_v12  ;;  %v1785_v23 = vld [vmem:[%s1733_s16 + $0x38] sm:$0xff]  ;;  %v432_v37 = vadd.s32 %v1813_v35, %v412_v34  ;;  %s477_s7 = smul.u32 2654435769, %s476_s28  ;;  %v444_v39 = vmul.u32 128, %v428_v36  ;;  %v440_v48 = vadd.s32 %v1813_v35, %v420_v45 }
  0x38   : > { %v286_v19 = vpack.c.bf16 %v1765_v15, %v1762_v14  ;;  %v1788_v24 = vld [vmem:[%s1733_s16 + $0x70] sm:$0xff]  ;;  %v1791_v25 = vld [vmem:[%s1733_s16 + $0x78] sm:$0xff]  ;;  %v285_v29 = vpack.c.bf16 %v1785_v23, %v1782_v22  ;;  %v429_v49 = vadd.s32 %v1813_v35, %v409_v46  ;;  %v433_v55 = vadd.s32 %v1813_v35, %v413_v51  ;;  %s1529_s28 = sshra.s32 %s1175_s0, 4  ;;  %s1530_s28 = int_to_ptr.hbm [resolvable:$true] %s1529_s28 }
  0x39   : > { %v1794_v26 = vld [vmem:[%s1733_s16 + $0x50] sm:$0xff]  ;;  %v1797_v27 = vld [vmem:[%s1733_s16 + $0x58] sm:$0xff]  ;;  %v289_v30 = vpack.c.bf16 %v1791_v25, %v1788_v24  ;;  %v448_v40 = vmul.u32 128, %v432_v37  ;;  %v460_v41 = vadd.s32 %v444_v39, %v1818_v38  ;;  %v1822_v43 = vstv %s477_s7  ;;  %s1160_s16 = scalar_lea.sflag [#allocation6], %s1727_s8  ;;  %s1531_s9 = scalar_lea.hbm %s1530_s28, 128 }
  0x3a   : > { %360 = vmatpush.bf16.msra.mxu0 %v1329_v2  ;;  %1339 = vmatpush.bf16.msra.mxu1 %v1329_v2  ;;  %v287_v31 = vpack.c.bf16 %v1797_v27, %v1794_v26  ;;  %v456_v52 = vmul.u32 128, %v440_v48  ;;  %v445_v53 = vmul.u32 128, %v429_v49  ;;  %v421_v58 = vadd.s32 104, %v1807_v33  ;;  %p1532_p1 = scmp.ne.s32.totalorder %s1530_s28, %s1531_s9  ;;  %p1536_p11 = scmp.lt.s32.totalorder %s1530_s28, %s2293_s6 }
  0x3b   : > { %1341 = vmatpush.bf16.msra.mxu3 %v1329_v2  ;;  %1340 = vmatpush.bf16.msra.mxu2 %v1329_v2  ;;  %v464_v42 = vadd.s32 %v448_v40, %v1818_v38  ;;  %v479_v44 = vxor.u32 %v1822_v43, %v460_v41  ;;  %v449_v60 = vmul.u32 128, %v433_v55  ;;  %v416_v63 = vadd.s32 64, %v1807_v33  ;;  %p1537_p9 = scmp.lt.s32.totalorder %s1535_s11, %s1531_s9 }
  0x3c   : > { %v472_v57 = vadd.s32 %v456_v52, %v1818_v38  ;;  %v461_v59 = vadd.s32 %v445_v53, %v1818_v38  ;;  %v441_v62 = vadd.s32 %v1813_v35, %v421_v58  ;;  %v410_v37 = vadd.s32 16, %v1807_v33  ;;  %p1533_p4 = pnand %p1532_p1, %p1699_p7 }
  0x3d   : > { %v483_v47 = vxor.u32 %v1822_v43, %v464_v42  ;;  %v495_v50 = vshrl.u32 %v479_v44, 16  ;;  %v417_v41 = vadd.s32 72, %v1807_v33  ;;  %p1538_p2 = por %p1537_p9, %p1536_p11 }
  0x3e   : > { %361 = vmatpush.bf16.msra.mxu0 %v1328_v3  ;;  %1342 = vmatpush.bf16.msra.mxu1 %v1328_v3  ;;  %v491_v1 = vxor.u32 %v1822_v43, %v472_v57  ;;  %v457_v2 = vmul.u32 128, %v441_v62  ;;  %p1534_p8 = pneg %p1533_p4 }
  0x3f   : > { %1344 = vmatpush.bf16.msra.mxu3 %v1328_v3  ;;  %1343 = vmatpush.bf16.msra.mxu2 %v1328_v3  ;;  %v499_v54 = vshrl.u32 %v483_v47, 16  ;;  %v511_v56 = vxor.u32 %v495_v50, %v479_v44  ;;  %v436_v3 = vadd.s32 %v1813_v35, %v416_v63  ;;  %v430_v44 = vadd.s32 %v1813_v35, %v410_v37 }
  0x40   : > { %v437_v52 = vadd.s32 %v1813_v35, %v417_v41  ;;  %v411_v41 = vadd.s32 24, %v1807_v33  ;;  %p1539_p10 = pnand %p1538_p2, %p1534_p8 }
  0x41   : > { %v515_v61 = vxor.u32 %v499_v54, %v483_v47  ;;  %v527_v0 = vmul.u32 2146121005, %v511_v56  ;;  %v446_v49 = vmul.u32 128, %v430_v44 }
  0x42   : > { %362 = vmatpush.bf16.msra.mxu0 %v1327_v4  ;;  %1345 = vmatpush.bf16.msra.mxu1 %v1327_v4  ;;  %v453_v57 = vmul.u32 128, %v437_v52 }
  0x43   : > { %1347 = vmatpush.bf16.msra.mxu3 %v1327_v4  ;;  %1346 = vmatpush.bf16.msra.mxu2 %v1327_v4  ;;  %v480_v4 = vxor.u32 %v1822_v43, %v461_v59  ;;  %v462_v54 = vadd.s32 %v446_v49, %v1818_v38  ;;  %v415_v49 = vadd.s32 56, %v1807_v33 }
  0x45   : > { %v481_v62 = vxor.u32 %v1822_v43, %v462_v54 }
  0x46   : > { %363 = vmatpush.bf16.msra.mxu0 %v1326_v5  ;;  %1348 = vmatpush.bf16.msra.mxu1 %v1326_v5 }
  0x47   : > { %1350 = vmatpush.bf16.msra.mxu3 %v1326_v5  ;;  %1349 = vmatpush.bf16.msra.mxu2 %v1326_v5  ;;  %v465_v5 = vadd.s32 %v449_v60, %v1818_v38 }
  0x4a   : > { %364 = vmatpush.bf16.msra.mxu0 %v1325_v6  ;;  %1351 = vmatpush.bf16.msra.mxu1 %v1325_v6 }
  0x4b   : > { %1353 = vmatpush.bf16.msra.mxu3 %v1325_v6  ;;  %1352 = vmatpush.bf16.msra.mxu2 %v1325_v6  ;;  %v531_v6 = vmul.u32 2146121005, %v515_v61 }
  0x4e   : > { %365 = vmatpush.bf16.msra.mxu0 %v1324_v7  ;;  %1354 = vmatpush.bf16.msra.mxu1 %v1324_v7 }
  0x4f   : > { %1356 = vmatpush.bf16.msra.mxu3 %v1324_v7  ;;  %1355 = vmatpush.bf16.msra.mxu2 %v1324_v7  ;;  %v452_v7 = vmul.u32 128, %v436_v3 }
  0x51   : > { %366 = vmatmul.bf16.vlgmr.msra.gmra.mxu0 %v282_v16  ;;  %376 = vmatmul.bf16.vlgmr.msra.gmra.mxu1 %v284_v17  ;;  %v473_v16 = vadd.s32 %v457_v2, %v1818_v38  ;;  %v543_v17 = vshrl.u32 %v527_v0, 15  ;;  %v469_v2 = vadd.s32 %v453_v57, %v1818_v38 }
  0x52   : > { %396 = vmatmul.bf16.vlgmr.msra.gmra.mxu3 %v288_v18  ;;  %386 = vmatmul.bf16.vlgmr.msra.gmra.mxu2 %v286_v19  ;;  %v507_v18 = vshrl.u32 %v491_v1, 16  ;;  %v468_v19 = vadd.s32 %v452_v7, %v1818_v38  ;;  %v497_v7 = vshrl.u32 %v481_v62, 16 }
  0x53   : > { %v559_v34 = vxor.u32 %v543_v17, %v527_v0 }
  0x54   : > { %v487_v32 = vxor.u32 %v1822_v43, %v468_v19  ;;  %v523_v36 = vxor.u32 %v507_v18, %v491_v1  ;;  %v513_v37 = vxor.u32 %v497_v7, %v481_v62 }
  0x55   : > { %v575_v47 = vmul.u32 2221713035, %v559_v34 }
  0x56   : > { %v503_v46 = vshrl.u32 %v487_v32, 16  ;;  %v539_v48 = vmul.u32 2146121005, %v523_v36 }
  0x57   : > { %v591_v58 = vshrl.u32 %v575_v47, 16 }
  0x58   : > { %v519_v56 = vxor.u32 %v503_v46, %v487_v32  ;;  %v555_v59 = vshrl.u32 %v539_v48, 15  ;;  %v422_v32 = vadd.s32 112, %v1807_v33 }
  0x59   : > { %v607_v3 = vxor.u32 %v591_v58, %v575_v47 }
  0x5a   : > { %v535_v1 = vmul.u32 2146121005, %v519_v56  ;;  %v431_v56 = vadd.s32 %v1813_v35, %v411_v41 }
  0x5c   : > { %v551_v19 = vshrl.u32 %v535_v1, 15 }
  0x61   : > { %371 = vmatmul.bf16.gmra.mxu0 %v283_v28  ;;  %381 = vmatmul.bf16.gmra.mxu1 %v285_v29  ;;  %v496_v28 = vshrl.u32 %v480_v4, 16  ;;  %v484_v29 = vxor.u32 %v1822_v43, %v465_v5 }
  0x62   : > { %401 = vmatmul.bf16.gmra.mxu3 %v289_v30  ;;  %391 = vmatmul.bf16.gmra.mxu2 %v287_v31  ;;  %v547_v30 = vshrl.u32 %v531_v6, 15  ;;  %v492_v31 = vxor.u32 %v1822_v43, %v473_v16  ;;  %v414_v16 = vadd.s32 48, %v1807_v33 }
  0x63   : > { %v512_v39 = vxor.u32 %v496_v28, %v480_v4  ;;  %v500_v40 = vshrl.u32 %v484_v29, 16  ;;  %v571_v4 = vxor.u32 %v555_v59, %v539_v48  ;;  %v488_v28 = vxor.u32 %v1822_v43, %v469_v2 }
  0x64   : > { %v563_v42 = vxor.u32 %v547_v30, %v531_v6  ;;  %v508_v45 = vshrl.u32 %v492_v31, 16  ;;  %v623_v30 = vshrl.u32 %v607_v3, 8  ;;  %v419_v3 = vadd.s32 88, %v1807_v33 }
  0x65   : > { %v528_v50 = vmul.u32 2146121005, %v512_v39  ;;  %v516_v51 = vxor.u32 %v500_v40, %v484_v29  ;;  %v434_v29 = vadd.s32 %v1813_v35, %v414_v16  ;;  %v504_v46 = vshrl.u32 %v488_v28, 16  ;;  %v1874_v16 = vld [vmem:[%s2290_s3] ss:$0 sm:$0xff] }
  0x66   : > { %v579_v53 = vmul.u32 2221713035, %v563_v42  ;;  %v524_v55 = vxor.u32 %v508_v45, %v492_v31  ;;  %v587_v31 = vmul.u32 2221713035, %v571_v4  ;;  %v442_v42 = vadd.s32 %v1813_v35, %v422_v32 }
  0x67   : > { %v544_v60 = vshrl.u32 %v528_v50, 15  ;;  %v532_v61 = vmul.u32 2146121005, %v516_v51  ;;  %v450_v39 = vmul.u32 128, %v434_v29  ;;  %v567_v45 = vxor.u32 %v551_v19, %v535_v1 }
  0x68   : > { %v595_v63 = vshrl.u32 %v579_v53, 16  ;;  %v540_v0 = vmul.u32 2146121005, %v524_v55  ;;  %v1860_v48 = vxor.u32 2147483648, %v623_v30  ;;  %v418_v51 = vadd.s32 80, %v1807_v33 }
  0x69   : > { %v560_v5 = vxor.u32 %v544_v60, %v528_v50  ;;  %v548_v6 = vshrl.u32 %v532_v61, 15  ;;  %v466_v47 = vadd.s32 %v450_v39, %v1818_v38  ;;  %v458_v50 = vmul.u32 128, %v442_v42 }
  0x6a   : > { %v611_v17 = vxor.u32 %v595_v63, %v579_v53  ;;  %v556_v18 = vshrl.u32 %v540_v0, 15  ;;  %v603_v52 = vshrl.u32 %v587_v31, 16  ;;  %v529_v55 = vmul.u32 2146121005, %v513_v37 }
  0x6b   : > { %v576_v34 = vmul.u32 2221713035, %v560_v5  ;;  %v564_v36 = vxor.u32 %v548_v6, %v532_v61  ;;  %v485_v57 = vxor.u32 %v1822_v43, %v466_v47  ;;  %v474_v58 = vadd.s32 %v458_v50, %v1818_v38 }
  0x6c   : > { %v627_v40 = vshrl.u32 %v611_v17, 8  ;;  %v572_v44 = vxor.u32 %v556_v18, %v540_v0  ;;  %v438_v59 = vadd.s32 %v1813_v35, %v418_v51  ;;  %v583_v62 = vmul.u32 2221713035, %v567_v45 }
  0x6d   : > { %v592_v53 = vshrl.u32 %v576_v34, 16  ;;  %v580_v54 = vmul.u32 2221713035, %v564_v36  ;;  %v520_v63 = vxor.u32 %v504_v46, %v488_v28  ;;  %v435_v0 = vadd.s32 %v1813_v35, %v415_v49 }
  0x6e   : > { %v1306_v60 = vxor.u32 2147483648, %v627_v40  ;;  %v588_v61 = vmul.u32 2221713035, %v572_v44  ;;  %v493_v1 = vxor.u32 %v1822_v43, %v474_v58  ;;  %v454_v2 = vmul.u32 128, %v438_v59 }
  0x6f   : > { %v619_v4 = vxor.u32 %v603_v52, %v587_v31  ;;  %v608_v5 = vxor.u32 %v592_v53, %v576_v34  ;;  %v596_v6 = vshrl.u32 %v580_v54, 16  ;;  %v545_v7 = vshrl.u32 %v529_v55, 15 }
  0x70   : > { %v447_v17 = vmul.u32 128, %v431_v56  ;;  %v501_v18 = vshrl.u32 %v485_v57, 16  ;;  %v470_v19 = vadd.s32 %v454_v2, %v1818_v38  ;;  %v439_v28 = vadd.s32 %v1813_v35, %v419_v3 }
  0x71   : > { %vm641_vm0 = vcmp.ge.s32.totalorder %v1860_v48, 2149161369  ;;  %v604_v29 = vshrl.u32 %v588_v61, 16  ;;  %v536_v30 = vmul.u32 2146121005, %v520_v63  ;;  %v509_v32 = vshrl.u32 %v493_v1, 16 }
  0x72   : > { %v599_v31 = vshrl.u32 %v583_v62, 16  ;;  %v451_v34 = vmul.u32 128, %v435_v0  ;;  %v489_v36 = vxor.u32 %v1822_v43, %v470_v19  ;;  %v455_v37 = vmul.u32 128, %v439_v28 }
  0x73   : > { %vm653_vm1 = vcmp.ge.s32.totalorder %v1306_v60, 2149161369  ;;  %v635_v39 = vshrl.u32 %v619_v4, 8  ;;  %v624_v40 = vshrl.u32 %v608_v5, 8  ;;  %v561_v41 = vxor.u32 %v545_v7, %v529_v55 }
  0x74   : > { %v1880_v45 = vxor.u32 %v596_v6, %v580_v54  ;;  %v463_v46 = vadd.s32 %v447_v17, %v1818_v38  ;;  %v517_v47 = vxor.u32 %v501_v18, %v485_v57  ;;  %v471_v49 = vadd.s32 %v455_v37, %v1818_v38 }
  0x75   : > { %v552_v52 = vshrl.u32 %v536_v30, 15  ;;  %v525_v53 = vxor.u32 %v509_v32, %v493_v1  ;;  %v620_v56 = vxor.u32 %v604_v29, %v588_v61  ;;  %v615_v58 = vxor.u32 %v599_v31, %v583_v62 }
  0x76   : > { %v467_v59 = vadd.s32 %v451_v34, %v1818_v38  ;;  %v505_v55 = vshrl.u32 %v489_v36, 16  ;;  %v577_v54 = vmul.u32 2221713035, %v561_v41  ;;  %v1888_v2 = vxor.u32 %v1822_v43, %v471_v49 }
  0x77   : > { %v1314_v57 = vxor.u32 2147483648, %v635_v39  ;;  %v1890_v3 = vxor.u32 2147483648, %v624_v40  ;;  %v482_v4 = vxor.u32 %v1822_v43, %v463_v46  ;;  %v533_v5 = vmul.u32 2146121005, %v517_v47 }
  0x78   : > { %v568_v62 = vxor.u32 %v552_v52, %v536_v30  ;;  %v541_v6 = vmul.u32 2146121005, %v525_v53  ;;  %v631_v18 = vshrl.u32 %v615_v58, 8  ;;  %v521_v19 = vxor.u32 %v505_v55, %v489_v36 }
  0x79   : > { %v628_v29 = vshrl.u32 %v1880_v45, 8  ;;  %v636_v32 = vshrl.u32 %v620_v56, 8  ;;  %v593_v34 = vshrl.u32 %v577_v54, 16  ;;  %v486_v48 = vxor.u32 %v1822_v43, %v467_v59 }
  0x7a   : > { %vm677_vm2 = vcmp.ge.s32.totalorder %v1314_v57, 2149161369  ;;  %v549_v30 = vshrl.u32 %v533_v5, 15  ;;  %vm644_vm3 = vcmp.ge.s32.totalorder %v1890_v3, 2149161369  ;;  %v557_v39 = vshrl.u32 %v541_v6, 15 }
  0x7b   : > { %v584_v37 = vmul.u32 2221713035, %v568_v62  ;;  %v1310_v41 = vxor.u32 2147483648, %v631_v18  ;;  %v1315_v46 = vxor.u32 2147483648, %v636_v32  ;;  %v609_v47 = vxor.u32 %v593_v34, %v577_v54 }
  0x7c   : > { %v502_v49 = vshrl.u32 %v486_v48, 16  ;;  %v565_v52 = vxor.u32 %v549_v30, %v533_v5  ;;  %v506_v53 = vshrl.u32 %v1888_v2, 16  ;;  %v573_v55 = vxor.u32 %v557_v39, %v541_v6 }
  0x7d   : > { %v600_v59 = vshrl.u32 %v584_v37, 16  ;;  %vm665_vm4 = vcmp.ge.s32.totalorder %v1310_v41, 2149161369  ;;  %vm680_vm5 = vcmp.ge.s32.totalorder %v1315_v46, 2149161369 }
  0x7e   : > { %v518_v5 = vxor.u32 %v502_v49, %v486_v48  ;;  %v581_v6 = vmul.u32 2221713035, %v565_v52 }
  0x7f   : > { %v616_v32 = vxor.u32 %v600_v59, %v584_v37 }
  0x80   : > { %v597_v37 = vshrl.u32 %v581_v6, 16 }
  0x82   : > { %v613_v46 = vxor.u32 %v597_v37, %v581_v6 }
  0xce   : > { %v367_v42 = vpop.f32.mrf.mxu0  ;;  %v377_v44 = vpop.f32.mrf.mxu1 }
  0xcf   : > { %v368_v50 = vadd.f32 %v1874_v16, %v367_v42  ;;  %v378_v51 = vadd.f32 %v1874_v16, %v377_v44  ;;  %v498_v42 = vshrl.u32 %v482_v4, 16  ;;  %v537_v44 = vmul.u32 2146121005, %v521_v19 }
  0xd0   : > { %v423_v19 = vadd.s32 120, %v1807_v33 }
  0xd1   : > { %v687_v63 = vmul.f32 1.1111112, %v368_v50  ;;  %v691_v0 = vmul.f32 1.1111112, %v378_v51  ;;  %v553_v54 = vshrl.u32 %v537_v44, 15 }
  0xd3   : > { %v703_v1 = vsel %vm641_vm0, %v687_v63, 0.0  ;;  %v707_v61 = vsel %vm653_vm1, %v691_v0, 0.0  ;;  %v1307_v0 = vxor.u32 2147483648, %v628_v29  ;;  %v522_v29 = vxor.u32 %v506_v53, %v1888_v2 }
  0xd4   : > { %v1897_v7 = vadd.f32 %v707_v61, %v1750_v10  ;;  %v1900_v17 = vadd.f32 %v703_v1, %v1744_v8  ;;  %v514_v1 = vxor.u32 %v498_v42, %v482_v4  ;;  %v443_v2 = vadd.s32 %v1813_v35, %v423_v19 }
  0xd5   : > { %v397_v28 = vpop.f32.mrf.mxu3  ;;  %v387_v31 = vpop.f32.mrf.mxu2  ;;  %v538_v41 = vmul.u32 2146121005, %v522_v29  ;;  %vm656_vm6 = vcmp.ge.s32.totalorder %v1307_v0, 2149161369 }
  0xd6   : > { %v398_v60 = vadd.f32 %v1874_v16, %v397_v28  ;;  %743 = vadd.xlane.f32.xlu2 %v1897_v7  ;;  %v369_v10 = vpop.f32.mrf.mxu0  ;;  %735 = vadd.xlane.f32.xlu0 %v1900_v17  ;;  %v767_v8 = vmul.f32 %v1900_v17, %v1900_v17  ;;  %v388_v36 = vadd.f32 %v1874_v16, %v387_v31  ;;  %v379_v63 = vpop.f32.mrf.mxu1  ;;  %v589_v31 = vmul.u32 2221713035, %v573_v55 }
  0xd7   : > { %v370_v45 = vadd.f32 %v1874_v16, %v369_v10  ;;  %v771_v51 = vmul.f32 %v1897_v7, %v1897_v7  ;;  %v380_v34 = vadd.f32 %v1874_v16, %v379_v63  ;;  %v530_v33 = vmul.u32 2146121005, %v514_v1 }
  0xd8   : > { %v699_v40 = vmul.f32 1.1111112, %v398_v60  ;;  %783 = vadd.xlane.f32.xlu1 %v767_v8  ;;  %v695_v56 = vmul.f32 1.1111112, %v388_v36  ;;  %v569_v10 = vxor.u32 %v553_v54, %v537_v44  ;;  %v534_v36 = vmul.u32 2146121005, %v518_v5 }
  0xd9   : > { %v688_v61 = vmul.f32 1.1111112, %v370_v45  ;;  %v632_v45 = vshrl.u32 %v616_v32, 8  ;;  %v692_v44 = vmul.f32 1.1111112, %v380_v34  ;;  %v546_v52 = vshrl.u32 %v530_v33, 15 }
  0xda   : > { %v715_v50 = vsel %vm677_vm2, %v699_v40, 0.0  ;;  %v711_v4 = vsel %vm665_vm4, %v695_v56, 0.0  ;;  %v585_v49 = vmul.u32 2221713035, %v569_v10  ;;  %v550_v35 = vshrl.u32 %v534_v36, 15 }
  0xdb   : > { %v1917_v58 = vadd.f32 %v715_v50, %v1756_v12  ;;  %v625_v12 = vshrl.u32 %v609_v47, 8  ;;  %v704_v8 = vsel %vm644_vm3, %v688_v61, 0.0  ;;  %v1932_v40 = vadd.f32 %v711_v4, %v1762_v14 }
  0xdc   : > { %v605_v47 = vshrl.u32 %v589_v31, 16  ;;  %v1936_v3 = vadd.f32 %v704_v8, %v1747_v9  ;;  %v554_v50 = vshrl.u32 %v538_v41, 15  ;;  %v459_v56 = vmul.u32 128, %v443_v2 }
  0xdd   : > { %v399_v57 = vpop.f32.mrf.mxu3  ;;  %v779_v62 = vmul.f32 %v1917_v58, %v1917_v58  ;;  %v389_v18 = vpop.f32.mrf.mxu2  ;;  %v1304_v39 = vxor.u32 2147483648, %v625_v12  ;;  %v1311_v55 = vxor.u32 2147483648, %v632_v45  ;;  %v708_v54 = vsel %vm656_vm6, %v692_v44, 0.0 }
  0xde   : > { %v400_v28 = vadd.f32 %v1874_v16, %v399_v57  ;;  %791 = vadd.xlane.f32.xlu2 %v771_v51  ;;  %759 = vadd.xlane.f32.xlu0 %v1917_v58  ;;  %v372_v48 = vpop.f32.mrf.mxu0  ;;  %v570_v59 = vxor.u32 %v554_v50, %v538_v41  ;;  %v390_v9 = vadd.f32 %v1874_v16, %v389_v18  ;;  %v601_v61 = vshrl.u32 %v585_v49, 16  ;;  %v382_v6 = vpop.f32.mrf.mxu1 }
  0xdf   : > { %v373_v30 = vadd.f32 %v1874_v16, %v372_v48  ;;  %vm647_vm7 = vcmp.ge.s32.totalorder %v1304_v39, 2149161369  ;;  %v621_v63 = vxor.u32 %v605_v47, %v589_v31  ;;  %v475_v1 = vadd.s32 %v459_v56, %v1818_v38 }
  0xe0   : > { %v700_v60 = vmul.f32 1.1111112, %v400_v28  ;;  %807 = vadd.xlane.f32.xlu1 %v779_v62  ;;  %v586_v62 = vmul.u32 2221713035, %v570_v59  ;;  %v1948_v19 = vxor.u32 %v546_v52, %v530_v33  ;;  %v775_v28 = vmul.f32 %v1932_v40, %v1932_v40 }
  0xe1   : > { %v689_v51 = vmul.f32 1.1111112, %v373_v30  ;;  %v494_v5 = vxor.u32 %v1822_v43, %v475_v1  ;;  %v566_v18 = vxor.u32 %v550_v35, %v534_v36  ;;  %vm668_vm8 = vcmp.ge.s32.totalorder %v1311_v55, 2149161369 }
  0xe2   : > { %v716_v42 = vsel %vm680_vm5, %v700_v60, 0.0  ;;  %v696_v12 = vmul.f32 1.1111112, %v390_v9  ;;  %v1953_v38 = vadd.f32 %v708_v54, %v1753_v11  ;;  %v637_v0 = vshrl.u32 %v621_v63, 8 }
  0xe3   : > { %v1941_v14 = vadd.f32 %v716_v42, %v1759_v13  ;;  %v705_v57 = vsel %vm647_vm7, %v689_v51, 0.0  ;;  %v629_v13 = vshrl.u32 %v613_v46, 8  ;;  %v617_v32 = vxor.u32 %v601_v61, %v585_v49 }
  0xe4   : > { %v1956_v29 = vadd.f32 %v705_v57, %v1776_v20  ;;  %v602_v43 = vshrl.u32 %v586_v62, 16  ;;  %v510_v31 = vshrl.u32 %v494_v5, 16  ;;  %v383_v34 = vadd.f32 %v1874_v16, %v382_v6 }
  0xe5   : > { %v392_v53 = vpop.f32.mrf.mxu2  ;;  %v402_v4 = vpop.f32.mrf.mxu3  ;;  %v1308_v48 = vxor.u32 2147483648, %v629_v13  ;;  %v582_v33 = vmul.u32 2221713035, %v566_v18  ;;  %v712_v8 = vsel %vm668_vm8, %v696_v12, 0.0  ;;  %v578_v36 = vmul.u32 2221713035, %v1948_v19 }
  0xe6   : > { %751 = vadd.xlane.f32.xlu2 %v1932_v40  ;;  %737 = vadd.xlane.f32.xlu0 %v1936_v3  ;;  %v618_v10 = vxor.u32 %v602_v43, %v586_v62  ;;  %v403_v20 = vadd.f32 %v1874_v16, %v402_v4  ;;  %v526_v30 = vxor.u32 %v510_v31, %v494_v5  ;;  %v1316_v2 = vxor.u32 2147483648, %v637_v0  ;;  %v384_v19 = vpop.f32.mrf.mxu1 }
  0xe7   : > { %v633_v39 = vshrl.u32 %v617_v32, 8  ;;  %v693_v41 = vmul.f32 1.1111112, %v383_v34  ;;  %v1966_v47 = vadd.f32 %v712_v8, %v1765_v15  ;;  %vm659_vm9 = vcmp.ge.s32.totalorder %v1308_v48, 2149161369 }
  0xe8   : > { %761 = vadd.xlane.f32.xlu1 %v1941_v14  ;;  %v634_v37 = vshrl.u32 %v618_v10, 8  ;;  %v542_v45 = vmul.u32 2146121005, %v526_v30  ;;  %v598_v44 = vshrl.u32 %v582_v33, 16  ;;  %v701_v50 = vmul.f32 1.1111112, %v403_v20 }
  0xe9   : > { %v768_v51 = vmul.f32 %v1936_v3, %v1936_v3  ;;  %v393_v52 = vadd.f32 %v1874_v16, %v392_v53  ;;  %vm683_vm10 = vcmp.ge.s32.totalorder %v1316_v2, 2149161369  ;;  %v772_v56 = vmul.f32 %v1953_v38, %v1953_v38 }
  0xea   : > { %v1313_v49 = vxor.u32 2147483648, %v634_v37  ;;  %v558_v35 = vshrl.u32 %v542_v45, 15  ;;  %v1312_v46 = vxor.u32 2147483648, %v633_v39  ;;  %v709_v59 = vsel %vm659_vm9, %v693_v41, 0.0 }
  0xeb   : > { %v614_v55 = vxor.u32 %v598_v44, %v582_v33  ;;  %v776_v63 = vmul.f32 %v1966_v47, %v1966_v47  ;;  %v717_v1 = vsel %vm683_vm10, %v701_v50, 0.0  ;;  %v697_v54 = vmul.f32 1.1111112, %v393_v52 }
  0xec   : > { %vm674_vm11 = vcmp.ge.s32.totalorder %v1313_v49, 2149161369  ;;  %v574_v15 = vxor.u32 %v558_v35, %v542_v45  ;;  %v594_v57 = vshrl.u32 %v578_v36, 16  ;;  %v1976_v62 = vadd.f32 %v709_v59, %v1782_v22 }
  0xed   : > { %v394_v60 = vpop.f32.mrf.mxu2  ;;  %v404_v61 = vpop.f32.mrf.mxu3  ;;  %vm671_vm12 = vcmp.ge.s32.totalorder %v1312_v46, 2149161369  ;;  %v630_v13 = vshrl.u32 %v614_v55, 8  ;;  %v385_v32 = vadd.f32 %v1874_v16, %v384_v19  ;;  %v769_v37 = vmul.f32 %v1956_v29, %v1956_v29 }
  0xee   : > { %745 = vadd.xlane.f32.xlu2 %v1953_v38  ;;  %799 = vadd.xlane.f32.xlu0 %v775_v28  ;;  %v395_v11 = vadd.f32 %v1874_v16, %v394_v60  ;;  %v590_v53 = vmul.u32 2221713035, %v574_v15  ;;  %v1979_v28 = vadd.f32 %v717_v1, %v1788_v24  ;;  %v405_v18 = vadd.f32 %v1874_v16, %v404_v61  ;;  %v374_v60 = vpop.f32.mrf.mxu0 }
  0xef   : > { %v713_v12 = vsel %vm671_vm12, %v697_v54, 0.0  ;;  %v610_v6 = vxor.u32 %v594_v57, %v578_v36  ;;  %v773_v4 = vmul.f32 %v1976_v62, %v1976_v62  ;;  %v1309_v43 = vxor.u32 2147483648, %v630_v13 }
  0xf0   : > { %739 = vadd.xlane.f32.xlu1 %v1956_v29  ;;  %v698_v42 = vmul.f32 1.1111112, %v395_v11  ;;  %v606_v5 = vshrl.u32 %v590_v53, 16  ;;  %v1986_v31 = vadd.f32 %v713_v12, %v1794_v26  ;;  %v702_v24 = vmul.f32 1.1111112, %v405_v18 }
  0xf1   : > { %v626_v48 = vshrl.u32 %v610_v6, 8  ;;  %v694_v33 = vmul.f32 1.1111112, %v385_v32  ;;  %vm662_vm14 = vcmp.ge.s32.totalorder %v1309_v43, 2149161369  ;;  %v375_v8 = vadd.f32 %v1874_v16, %v374_v60 }
  0xf2   : > { %v714_v9 = vsel %vm674_vm11, %v698_v42, 0.0  ;;  %v622_v0 = vxor.u32 %v606_v5, %v590_v53  ;;  %v777_v10 = vmul.f32 %v1986_v31, %v1986_v31  ;;  %v780_v42 = vmul.f32 %v1941_v14, %v1941_v14 }
  0xf3   : > { %v1305_v26 = vxor.u32 2147483648, %v626_v48  ;;  %v710_v20 = vsel %vm662_vm14, %v694_v33, 0.0  ;;  %v690_v30 = vmul.f32 1.1111112, %v375_v8  ;;  %v2007_v41 = vadd.f32 %v714_v9, %v1797_v27 }
  0xf4   : > { %v638_v22 = vshrl.u32 %v622_v0, 8  ;;  %v1995_v36 = vadd.f32 %v710_v20, %v1785_v23 }
  0xf5   : > { %vm650_vm15 = vcmp.ge.s32.totalorder %v1305_v26, 2149161369 }
  0xf6   : > { %785 = vadd.xlane.f32.xlu2 %v768_v51  ;;  %793 = vadd.xlane.f32.xlu0 %v772_v56  ;;  %v1317_v34 = vxor.u32 2147483648, %v638_v22  ;;  %v706_v2 = vsel %vm650_vm15, %v690_v30, 0.0  ;;  %v774_v39 = vmul.f32 %v1995_v36, %v1995_v36 }
  0xf7   : > { %v2003_v16 = vadd.f32 %v706_v2, %v1779_v21  ;;  %v778_v21 = vmul.f32 %v2007_v41, %v2007_v41 }
  0xf8   : > { %801 = vadd.xlane.f32.xlu1 %v776_v63  ;;  %vm686_vm13 = vcmp.ge.s32.totalorder %v1317_v34, 2149161369 }
  0xf9   : > { %v718_v11 = vsel %vm686_vm13, %v702_v24, 0.0  ;;  %v770_v27 = vmul.f32 %v2003_v16, %v2003_v16 }
  0xfa   : > { %v2010_v23 = vadd.f32 %v718_v11, %v1791_v25  ;;  %v781_v25 = vmul.f32 %v1979_v28, %v1979_v28 }
  0xfc   : > { %v782_v45 = vmul.f32 %v2010_v23, %v2010_v23 }
  0xfe   : > { %763 = vadd.xlane.f32.xlu2 %v1979_v28  ;;  %753 = vadd.xlane.f32.xlu0 %v1966_v47 }
 0x100   : > { %795 = vadd.xlane.f32.xlu1 %v773_v4 }
 0x106   : > { %803 = vadd.xlane.f32.xlu2 %v777_v10  ;;  %747 = vadd.xlane.f32.xlu0 %v1976_v62 }
 0x108   : > { %755 = vadd.xlane.f32.xlu1 %v1986_v31 }
 0x10e   : > { %797 = vadd.xlane.f32.xlu2 %v774_v39  ;;  %787 = vadd.xlane.f32.xlu0 %v769_v37 }
 0x110   : > { %741 = vadd.xlane.f32.xlu1 %v2003_v16 }
 0x116   : > { %757 = vadd.xlane.f32.xlu2 %v2007_v41  ;;  %765 = vadd.xlane.f32.xlu0 %v2010_v23 }
 0x118   : > { %749 = vadd.xlane.f32.xlu1 %v1995_v36 }
 0x11e   : > { %809 = vadd.xlane.f32.xlu2 %v780_v42  ;;  %805 = vadd.xlane.f32.xlu0 %v778_v21 }
 0x120   : > { %789 = vadd.xlane.f32.xlu1 %v770_v27 }
 0x126   : > { %811 = vadd.xlane.f32.xlu0 %v781_v25 }
 0x128   : > { %813 = vadd.xlane.f32.xlu1 %v782_v45  ;;  %v2047_v45 = vld [vmem:[%s2291_s4] ss:$0 sm:$0xff] }
 0x149   : > { %v744_v44 = vpop.xlane.xlu2 %743  ;;  %v736_v49 = vpop.xlane.xlu0 %735 }
 0x14a   : > { %v815_v50 = vmul.f32 0.0078125, %v736_v49  ;;  %v2025_v56 = vmul.f32 0.0078125, %v744_v44 }
 0x14b   : > { %v784_v51 = vpop.xlane.xlu1 %783 }
 0x14c   : > { %v847_v52 = vmul.f32 %v815_v50, %v815_v50  ;;  %v831_v35 = vmul.f32 0.0078125, %v784_v51  ;;  %v851_v59 = vmul.f32 %v2025_v56, %v2025_v56  ;;  %v1072_v25 = vsub.f32 %v1900_v17, %v815_v50 }
 0x14d   : > { %v1076_v50 = vsub.f32 %v1897_v7, %v2025_v56 }
 0x14e   : > { %v863_v46 = vsub.f32 %v831_v35, %v847_v52 }
 0x150   : > { %v879_v9 = vmax.f32 %v863_v46, 0.0  ;;  %v2054_v46 = vld [vmem:[%s2292_s5] ss:$0 sm:$0xff] }
 0x151   : > { %v792_v15 = vpop.xlane.xlu2 %791  ;;  %v760_v55 = vpop.xlane.xlu0 %759 }
 0x152   : > { %v835_v63 = vmul.f32 0.0078125, %v792_v15  ;;  %v2029_v1 = vmul.f32 0.0078125, %v760_v55  ;;  %v895_v54 = vadd.f32 1e-05, %v879_v9 }
 0x153   : > { %v808_v61 = vpop.xlane.xlu1 %807 }
 0x154   : > { %v867_v53 = vsub.f32 %v835_v63, %v851_v59  ;;  %v859_v57 = vmul.f32 %v2029_v1, %v2029_v1  ;;  %v843_v5 = vmul.f32 0.0078125, %v808_v61  ;;  %1423 = vrsqrt.f32 %v895_v54 }
 0x155   : > { %vm917_vm1 = vweird.f32 %v895_v54 }
 0x156   : > { %v883_v19 = vmax.f32 %v867_v53, 0.0  ;;  %v875_v13 = vsub.f32 %v843_v5, %v859_v57 }
 0x158   : > { %v899_v18 = vadd.f32 1e-05, %v883_v19  ;;  %v891_v12 = vmax.f32 %v875_v13, 0.0 }
 0x159   : > { %v752_v0 = vpop.xlane.xlu2 %751  ;;  %v738_v6 = vpop.xlane.xlu0 %737 }
 0x15a   : > { %1425 = vrsqrt.f32 %v899_v18  ;;  %v907_v4 = vadd.f32 1e-05, %v891_v12  ;;  %v1424_v32 = vpop.eup %1423  ;;  %v2035_v34 = vmul.f32 0.0078125, %v752_v0  ;;  %v2041_v21 = vmul.f32 0.0078125, %v738_v6 }
 0x15b   : > { %v2033_v22 = vpop.xlane.xlu1 %761  ;;  %v912_v43 = vmul.f32 %v1424_v32, %v895_v54  ;;  %vm918_vm0 = vweird.f32 %v1424_v32  ;;  %vm957_vm4 = vweird.f32 %v899_v18  ;;  %v1084_v6 = vsub.f32 %v1917_v58, %v2029_v1 }
 0x15c   : > { %1427 = vrsqrt.f32 %v907_v4  ;;  %v855_v33 = vmul.f32 %v2035_v34, %v2035_v34  ;;  %vm919_vm2 = vmor %vm917_vm1, %vm918_vm0  ;;  %v848_v15 = vmul.f32 %v2041_v21, %v2041_v21  ;;  %vm1037_vm7 = vweird.f32 %v907_v4 }
 0x15d   : > { %v913_v24 = vmul.f32 %v1424_v32, %v912_v43 }
 0x15f   : > { %v914_v48 = vmul.f32 0.5, %v913_v24 }
 0x160   : > { %v1426_v60 = vpop.eup %1425 }
 0x161   : > { %v952_v11 = vmul.f32 %v1426_v60, %v899_v18  ;;  %v746_v10 = vpop.xlane.xlu2 %745  ;;  %v800_v8 = vpop.xlane.xlu0 %799  ;;  %v915_v20 = vsub.f32 1.5, %v914_v48  ;;  %vm958_vm3 = vweird.f32 %v1426_v60 }
 0x162   : > { %v1428_v26 = vpop.eup %1427  ;;  %v839_v30 = vmul.f32 0.0078125, %v800_v8  ;;  %v2049_v52 = vmul.f32 0.0078125, %v746_v10  ;;  %vm959_vm6 = vmor %vm957_vm4, %vm958_vm3 }
 0x163   : > { %v953_v2 = vmul.f32 %v1426_v60, %v952_v11  ;;  %v1032_v39 = vmul.f32 %v1428_v26, %v907_v4  ;;  %v2039_v37 = vpop.xlane.xlu1 %739  ;;  %v916_v42 = vmul.f32 %v1424_v32, %v915_v20  ;;  %vm1038_vm5 = vweird.f32 %v1428_v26 }
 0x164   : > { %v871_v27 = vsub.f32 %v839_v30, %v855_v33  ;;  %v852_v5 = vmul.f32 %v2049_v52, %v2049_v52  ;;  %vm1039_vm8 = vmor %vm1037_vm7, %vm1038_vm5 }
 0x165   : > { %v954_v44 = vmul.f32 0.5, %v953_v2  ;;  %v1033_v49 = vmul.f32 %v1428_v26, %v1032_v39  ;;  %v920_v51 = vsel %vm919_vm2, %v1424_v32, %v916_v42 }
 0x166   : > { %v887_v35 = vmax.f32 %v871_v27, 0.0  ;;  %v1088_v59 = vmul.f32 %v1072_v25, %v920_v51 }
 0x167   : > { %v955_v9 = vsub.f32 1.5, %v954_v44  ;;  %v1034_v17 = vmul.f32 0.5, %v1033_v49 }
 0x168   : > { %v903_v55 = vadd.f32 1e-05, %v887_v35  ;;  %v1107_v63 = vmul.f32 %v2047_v45, %v1088_v59 }
 0x169   : > { %v956_v54 = vmul.f32 %v1426_v60, %v955_v9  ;;  %v1035_v61 = vsub.f32 1.5, %v1034_v17  ;;  %v786_v53 = vpop.xlane.xlu2 %785  ;;  %v794_v57 = vpop.xlane.xlu0 %793 }
 0x16a   : > { %1429 = vrsqrt.f32 %v903_v55  ;;  %v832_v19 = vmul.f32 0.0078125, %v786_v53  ;;  %v836_v7 = vmul.f32 0.0078125, %v794_v57  ;;  %v1127_v56 = vadd.f32 %v2054_v46, %v1107_v63 }
 0x16b   : > { %v960_v13 = vsel %vm959_vm6, %v1426_v60, %v956_v54  ;;  %v1036_v18 = vmul.f32 %v1428_v26, %v1035_v61  ;;  %v802_v12 = vpop.xlane.xlu1 %801  ;;  %vm997_vm10 = vweird.f32 %v903_v55  ;;  %v1080_v61 = vsub.f32 %v1932_v40, %v2035_v34 }
 0x16c   : > { %v1092_v0 = vmul.f32 %v1076_v50, %v960_v13  ;;  %v864_v32 = vsub.f32 %v832_v19, %v848_v15  ;;  %v868_v43 = vsub.f32 %v836_v7, %v852_v5  ;;  %1143 = vst [vmem:[%s2069_s27] sm:$0xff] %v1127_v56  ;;  %v840_v44 = vmul.f32 0.0078125, %v802_v12 }
 0x16d   : > { %v1040_v24 = vsel %vm1039_vm8, %v1428_v26, %v1036_v18 }
 0x16e   : > { %v1111_v60 = vmul.f32 %v2047_v45, %v1092_v0  ;;  %v1100_v48 = vmul.f32 %v1084_v6, %v1040_v24  ;;  %v880_v4 = vmax.f32 %v864_v32, 0.0  ;;  %v884_v33 = vmax.f32 %v868_v43, 0.0 }
 0x16f   : > { %v2101_v24 = vmul.f32 0.0078125, %v2039_v37 }
 0x170   : > { %v1430_v11 = vpop.eup %1429  ;;  %v1131_v58 = vadd.f32 %v2054_v46, %v1111_v60  ;;  %v1119_v1 = vmul.f32 %v2047_v45, %v1100_v48  ;;  %v896_v10 = vadd.f32 1e-05, %v880_v4  ;;  %v2075_v8 = vadd.f32 1e-05, %v884_v33 }
 0x171   : > { %v992_v20 = vmul.f32 %v1430_v11, %v903_v55  ;;  %v2077_v30 = vpop.xlane.xlu2 %763  ;;  %v754_v2 = vpop.xlane.xlu0 %753  ;;  %vm998_vm9 = vweird.f32 %v1430_v11 }
 0x172   : > { %1147 = vst [vmem:[%s2069_s27 + $0x20] sm:$0xff] %v1131_v58  ;;  %v1139_v26 = vadd.f32 %v2054_v46, %v1119_v1  ;;  %1431 = vrsqrt.f32 %v896_v10  ;;  %v2082_v42 = vmul.f32 0.0078125, %v754_v2  ;;  %vm999_vm11 = vmor %vm997_vm10, %vm998_vm9  ;;  %v1073_v58 = vsub.f32 %v1936_v3, %v2041_v21 }
 0x173   : > { %v993_v39 = vmul.f32 %v1430_v11, %v992_v20  ;;  %1433 = vrsqrt.f32 %v2075_v8  ;;  %v796_v27 = vpop.xlane.xlu1 %795  ;;  %vm927_vm14 = vweird.f32 %v896_v10  ;;  %vm967_vm0 = vweird.f32 %v2075_v8 }
 0x174   : > { %1155 = vst [vmem:[%s2069_s27 + $0x60] sm:$0xff] %v1139_v26  ;;  %v856_v49 = vmul.f32 %v2082_v42, %v2082_v42  ;;  %v837_v55 = vmul.f32 0.0078125, %v796_v27 }
 0x175   : > { %v994_v25 = vmul.f32 0.5, %v993_v39 }
 0x176   : > { %v872_v35 = vsub.f32 %v840_v44, %v856_v49  ;;  %v1077_v44 = vsub.f32 %v1953_v38, %v2049_v52 }
 0x177   : > { %v995_v51 = vsub.f32 1.5, %v994_v25 }
 0x178   : > { %v1432_v59 = vpop.eup %1431  ;;  %v888_v15 = vmax.f32 %v872_v35, 0.0 }
 0x179   : > { %v1434_v9 = vpop.eup %1433  ;;  %v996_v17 = vmul.f32 %v1430_v11, %v995_v51  ;;  %v922_v50 = vmul.f32 %v1432_v59, %v896_v10  ;;  %v804_v63 = vpop.xlane.xlu2 %803  ;;  %vm928_vm12 = vweird.f32 %v1432_v59  ;;  %v849_v10 = vmul.f32 %v2101_v24, %v2101_v24 }
 0x17a   : > { %v748_v54 = vpop.xlane.xlu0 %747  ;;  %v962_v53 = vmul.f32 %v1434_v9, %v2075_v8  ;;  %v2092_v7 = vadd.f32 1e-05, %v888_v15  ;;  %v841_v40 = vmul.f32 0.0078125, %v804_v63  ;;  %vm968_vm13 = vweird.f32 %v1434_v9  ;;  %vm929_vm15 = vmor %vm927_vm14, %vm928_vm12 }
 0x17b   : > { %v2090_v57 = vmul.f32 0.0078125, %v748_v54  ;;  %v1000_v5 = vsel %vm999_vm11, %v1430_v11, %v996_v17  ;;  %v923_v19 = vmul.f32 %v1432_v59, %v922_v50  ;;  %v756_v56 = vpop.xlane.xlu1 %755  ;;  %vm969_vm1 = vmor %vm967_vm0, %vm968_vm13 }
 0x17c   : > { %v1096_v13 = vmul.f32 %v1080_v61, %v1000_v5  ;;  %v963_v18 = vmul.f32 %v1434_v9, %v962_v53  ;;  %1435 = vrsqrt.f32 %v2092_v7  ;;  %v2097_v34 = vmul.f32 0.0078125, %v756_v56 }
 0x17d   : > { %v853_v12 = vmul.f32 %v2090_v57, %v2090_v57  ;;  %v924_v0 = vmul.f32 0.5, %v923_v19  ;;  %v2126_v61 = vmul.f32 0.0078125, %v2033_v22  ;;  %vm1007_vm3 = vweird.f32 %v2092_v7 }
 0x17e   : > { %v1115_v6 = vmul.f32 %v2047_v45, %v1096_v13  ;;  %v964_v32 = vmul.f32 0.5, %v963_v18  ;;  %v857_v48 = vmul.f32 %v2097_v34, %v2097_v34 }
 0x17f   : > { %v869_v43 = vsub.f32 %v837_v55, %v853_v12  ;;  %v925_v60 = vsub.f32 1.5, %v924_v0 }
 0x180   : > { %v1135_v4 = vadd.f32 %v2054_v46, %v1115_v6  ;;  %v965_v33 = vsub.f32 1.5, %v964_v32  ;;  %v873_v20 = vsub.f32 %v841_v40, %v857_v48  ;;  %v860_v6 = vmul.f32 %v2126_v61, %v2126_v61 }
 0x181   : > { %v885_v11 = vmax.f32 %v869_v43, 0.0  ;;  %v926_v1 = vmul.f32 %v1432_v59, %v925_v60  ;;  %v798_v2 = vpop.xlane.xlu2 %797  ;;  %v1081_v32 = vsub.f32 %v1966_v47, %v2082_v42  ;;  %v1078_v43 = vsub.f32 %v1976_v62, %v2090_v57 }
 0x182   : > { %v788_v26 = vpop.xlane.xlu0 %787  ;;  %1151 = vst [vmem:[%s2069_s27 + $0x40] sm:$0xff] %v1135_v4  ;;  %v966_v37 = vmul.f32 %v1434_v9, %v965_v33  ;;  %v1436_v25 = vpop.eup %1435  ;;  %v889_v3 = vmax.f32 %v873_v20, 0.0  ;;  %v1082_v33 = vsub.f32 %v1986_v31, %v2097_v34 }
 0x183   : > { %v2110_v39 = vadd.f32 1e-05, %v885_v11  ;;  %v833_v27 = vmul.f32 0.0078125, %v788_v26  ;;  %v930_v49 = vsel %vm929_vm15, %v1432_v59, %v926_v1  ;;  %v742_v21 = vpop.xlane.xlu1 %741  ;;  %v1002_v17 = vmul.f32 %v1436_v25, %v2092_v7 }
 0x184   : > { %v1089_v51 = vmul.f32 %v1073_v58, %v930_v49  ;;  %v970_v35 = vsel %vm969_vm1, %v1434_v9, %v966_v37  ;;  %v2119_v50 = vadd.f32 1e-05, %v889_v3  ;;  %vm1008_vm2 = vweird.f32 %v1436_v25 }
 0x185   : > { %v1093_v8 = vmul.f32 %v1077_v44, %v970_v35  ;;  %1437 = vrsqrt.f32 %v2110_v39  ;;  %v1003_v52 = vmul.f32 %v1436_v25, %v1002_v17  ;;  %v865_v59 = vsub.f32 %v833_v27, %v849_v10  ;;  %vm1009_vm4 = vmor %vm1007_vm3, %vm1008_vm2 }
 0x186   : > { %v1108_v38 = vmul.f32 %v2047_v45, %v1089_v51  ;;  %1439 = vrsqrt.f32 %v2119_v50  ;;  %v2136_v22 = vmul.f32 0.0078125, %v742_v21  ;;  %vm977_vm5 = vweird.f32 %v2110_v39 }
 0x187   : > { %v1112_v15 = vmul.f32 %v2047_v45, %v1093_v8  ;;  %v1004_v9 = vmul.f32 0.5, %v1003_v52  ;;  %v881_v54 = vmax.f32 %v865_v59, 0.0  ;;  %v838_v58 = vmul.f32 0.0078125, %v798_v2 }
 0x188   : > { %v1128_v63 = vadd.f32 %v2054_v46, %v1108_v38  ;;  %vm1017_vm6 = vweird.f32 %v2119_v50  ;;  %v850_v62 = vmul.f32 %v2136_v22, %v2136_v22 }
 0x189   : > { %v1132_v53 = vadd.f32 %v2054_v46, %v1112_v15  ;;  %v758_v5 = vpop.xlane.xlu2 %757  ;;  %v1005_v56 = vsub.f32 1.5, %v1004_v9  ;;  %v2130_v13 = vadd.f32 1e-05, %v881_v54 }
 0x18a   : > { %v766_v19 = vpop.xlane.xlu0 %765  ;;  %1144 = vst [vmem:[%s2069_s27 + $0x8] sm:$0xff] %v1128_v63  ;;  %v2144_v7 = vmul.f32 0.0078125, %v758_v5 }
 0x18b   : > { %v1438_v18 = vpop.eup %1437  ;;  %1148 = vst [vmem:[%s2069_s27 + $0x28] sm:$0xff] %v1132_v53  ;;  %v750_v55 = vpop.xlane.xlu1 %749  ;;  %v1006_v12 = vmul.f32 %v1436_v25, %v1005_v56  ;;  %1441 = vrsqrt.f32 %v2130_v13  ;;  %v2166_v52 = vmul.f32 0.0078125, %v766_v19  ;;  %vm937_vm12 = vweird.f32 %v2130_v13 }
 0x18c   : > { %v972_v0 = vmul.f32 %v1438_v18, %v2110_v39  ;;  %v1440_v40 = vpop.eup %1439  ;;  %v2150_v1 = vmul.f32 0.0078125, %v750_v55  ;;  %vm978_vm7 = vweird.f32 %v1438_v18  ;;  %v858_v57 = vmul.f32 %v2144_v7, %v2144_v7 }
 0x18d   : > { %v1010_v60 = vsel %vm1009_vm4, %v1436_v25, %v1006_v12  ;;  %v1012_v4 = vmul.f32 %v1440_v40, %v2119_v50  ;;  %vm1018_vm8 = vweird.f32 %v1440_v40  ;;  %vm979_vm9 = vmor %vm977_vm5, %vm978_vm7  ;;  %v1074_v50 = vsub.f32 %v1956_v29, %v2101_v24 }
 0x18e   : > { %v973_v48 = vmul.f32 %v1438_v18, %v972_v0  ;;  %v1097_v11 = vmul.f32 %v1081_v32, %v1010_v60  ;;  %v854_v31 = vmul.f32 %v2150_v1, %v2150_v1  ;;  %vm1019_vm10 = vmor %vm1017_vm6, %vm1018_vm8  ;;  %v2182_v60 = vmul.f32 0.0078125, %v2077_v30 }
 0x18f   : > { %v1013_v47 = vmul.f32 %v1440_v40, %v1012_v4 }
 0x190   : > { %v974_v20 = vmul.f32 0.5, %v973_v48  ;;  %v1116_v42 = vmul.f32 %v2047_v45, %v1097_v11  ;;  %v870_v21 = vsub.f32 %v838_v58, %v854_v31  ;;  %v861_v11 = vmul.f32 %v2182_v60, %v2182_v60 }
 0x191   : > { %v810_v34 = vpop.xlane.xlu2 %809  ;;  %v1442_v26 = vpop.eup %1441  ;;  %v1014_v27 = vmul.f32 0.5, %v1013_v47 }
 0x192   : > { %v806_v2 = vpop.xlane.xlu0 %805  ;;  %v975_v37 = vsub.f32 1.5, %v974_v20  ;;  %v844_v25 = vmul.f32 0.0078125, %v810_v34  ;;  %v1136_v49 = vadd.f32 %v2054_v46, %v1116_v42  ;;  %v932_v3 = vmul.f32 %v1442_v26, %v2130_v13 }
 0x193   : > { %v842_v44 = vmul.f32 0.0078125, %v806_v2  ;;  %v790_v10 = vpop.xlane.xlu1 %789  ;;  %v1015_v35 = vsub.f32 1.5, %v1014_v27  ;;  %v886_v59 = vmax.f32 %v870_v21, 0.0  ;;  %vm938_vm11 = vweird.f32 %v1442_v26 }
 0x194   : > { %v976_v51 = vmul.f32 %v1438_v18, %v975_v37  ;;  %v876_v17 = vsub.f32 %v844_v25, %v860_v6  ;;  %1152 = vst [vmem:[%s2069_s27 + $0x48] sm:$0xff] %v1136_v49  ;;  %v933_v38 = vmul.f32 %v1442_v26, %v932_v3  ;;  %v834_v15 = vmul.f32 0.0078125, %v790_v10  ;;  %vm939_vm13 = vmor %vm937_vm12, %vm938_vm11 }
 0x195   : > { %v874_v8 = vsub.f32 %v842_v44, %v858_v57  ;;  %v1016_v9 = vmul.f32 %v1440_v40, %v1015_v35  ;;  %v2171_v55 = vadd.f32 1e-05, %v886_v59  ;;  %v862_v20 = vmul.f32 %v2166_v52, %v2166_v52 }
 0x196   : > { %v980_v63 = vsel %vm979_vm9, %v1438_v18, %v976_v51  ;;  %v892_v54 = vmax.f32 %v876_v17, 0.0  ;;  %v934_v56 = vmul.f32 0.5, %v933_v38  ;;  %v866_v0 = vsub.f32 %v834_v15, %v850_v62 }
 0x197   : > { %v890_v53 = vmax.f32 %v874_v8, 0.0  ;;  %v1094_v5 = vmul.f32 %v1078_v43, %v980_v63  ;;  %v1020_v39 = vsel %vm1019_vm10, %v1440_v40, %v1016_v9  ;;  %1443 = vrsqrt.f32 %v2171_v55 }
 0x198   : > { %v2173_v12 = vadd.f32 1e-05, %v892_v54  ;;  %v1098_v6 = vmul.f32 %v1082_v33, %v1020_v39  ;;  %v935_v32 = vsub.f32 1.5, %v934_v56  ;;  %v882_v29 = vmax.f32 %v866_v0, 0.0 }
 0x199   : > { %v2175_v19 = vadd.f32 1e-05, %v890_v53  ;;  %v1113_v18 = vmul.f32 %v2047_v45, %v1094_v5  ;;  %vm987_vm0 = vweird.f32 %v2171_v55  ;;  %v1079_v56 = vsub.f32 %v1995_v36, %v2150_v1 }
 0x19a   : > { %v812_v43 = vpop.xlane.xlu0 %811  ;;  %1445 = vrsqrt.f32 %v2173_v12  ;;  %v1117_v48 = vmul.f32 %v2047_v45, %v1098_v6  ;;  %v936_v4 = vmul.f32 %v1442_v26, %v935_v32  ;;  %v2196_v62 = vadd.f32 1e-05, %v882_v29 }
 0x19b   : > { %v1133_v40 = vadd.f32 %v2054_v46, %v1113_v18  ;;  %1447 = vrsqrt.f32 %v2175_v19  ;;  %v814_v33 = vpop.xlane.xlu1 %813  ;;  %v845_v30 = vmul.f32 0.0078125, %v812_v43  ;;  %vm1047_vm3 = vweird.f32 %v2173_v12 }
 0x19c   : > { %v846_v24 = vmul.f32 0.0078125, %v814_v33  ;;  %v1137_v13 = vadd.f32 %v2054_v46, %v1117_v48  ;;  %v940_v58 = vsel %vm939_vm13, %v1442_v26, %v936_v4  ;;  %1449 = vrsqrt.f32 %v2196_v62 }
 0x19d   : > { %1149 = vst [vmem:[%s2069_s27 + $0x30] sm:$0xff] %v1133_v40  ;;  %v1090_v47 = vmul.f32 %v1074_v50, %v940_v58  ;;  %v877_v42 = vsub.f32 %v845_v30, %v861_v11  ;;  %v1444_v57 = vpop.eup %1443  ;;  %v1085_v18 = vsub.f32 %v1941_v14, %v2126_v61  ;;  %vm1027_vm5 = vweird.f32 %v2175_v19 }
 0x19e   : > { %1153 = vst [vmem:[%s2069_s27 + $0x50] sm:$0xff] %v1137_v13  ;;  %v878_v31 = vsub.f32 %v846_v24, %v862_v20  ;;  %v982_v37 = vmul.f32 %v1444_v57, %v2171_v55  ;;  %vm988_vm14 = vweird.f32 %v1444_v57  ;;  %v1083_v55 = vsub.f32 %v2007_v41, %v2144_v7 }
 0x19f   : > { %v1109_v2 = vmul.f32 %v2047_v45, %v1090_v47  ;;  %v893_v25 = vmax.f32 %v877_v42, 0.0  ;;  %vm989_vm2 = vmor %vm987_vm0, %vm988_vm14  ;;  %vm947_vm8 = vweird.f32 %v2196_v62  ;;  %v1075_v24 = vsub.f32 %v2003_v16, %v2136_v22 }
 0x1a0   : > { %v1446_v34 = vpop.eup %1445  ;;  %v983_v49 = vmul.f32 %v1444_v57, %v982_v37  ;;  %v894_v51 = vmax.f32 %v878_v31, 0.0 }
 0x1a1   : > { %v1448_v27 = vpop.eup %1447  ;;  %v1042_v26 = vmul.f32 %v1446_v34, %v2173_v12  ;;  %v1129_v44 = vadd.f32 %v2054_v46, %v1109_v2  ;;  %v2205_v10 = vadd.f32 1e-05, %v893_v25  ;;  %vm1048_vm15 = vweird.f32 %v1446_v34 }
 0x1a2   : > { %v1022_v3 = vmul.f32 %v1448_v27, %v2175_v19  ;;  %v984_v35 = vmul.f32 0.5, %v983_v49  ;;  %v2209_v38 = vadd.f32 1e-05, %v894_v51  ;;  %v1450_v59 = vpop.eup %1449  ;;  %vm1028_vm1 = vweird.f32 %v1448_v27  ;;  %vm1049_vm4 = vmor %vm1047_vm3, %vm1048_vm15 }
 0x1a3   : > { %v1043_v21 = vmul.f32 %v1446_v34, %v1042_v26  ;;  %1145 = vst [vmem:[%s2069_s27 + $0x10] sm:$0xff] %v1129_v44  ;;  %1451 = vrsqrt.f32 %v2205_v10  ;;  %v942_v54 = vmul.f32 %v1450_v59, %v2196_v62  ;;  %vm1029_vm6 = vmor %vm1027_vm5, %vm1028_vm1  ;;  %vm948_vm7 = vweird.f32 %v1450_v59 }
 0x1a4   : > { %v1023_v17 = vmul.f32 %v1448_v27, %v1022_v3  ;;  %v985_v15 = vsub.f32 1.5, %v984_v35  ;;  %1453 = vrsqrt.f32 %v2209_v38  ;;  %vm949_vm9 = vmor %vm947_vm8, %vm948_vm7  ;;  %vm1057_vm11 = vweird.f32 %v2205_v10 }
 0x1a5   : > { %v1044_v8 = vmul.f32 0.5, %v1043_v21  ;;  %v943_v0 = vmul.f32 %v1450_v59, %v942_v54  ;;  %v1086_v2 = vsub.f32 %v1979_v28, %v2182_v60  ;;  %vm1067_vm14 = vweird.f32 %v2209_v38 }
 0x1a6   : > { %v1024_v63 = vmul.f32 0.5, %v1023_v17  ;;  %v986_v53 = vmul.f32 %v1444_v57, %v985_v15  ;;  %v1087_v25 = vsub.f32 %v2010_v23, %v2166_v52 }
 0x1a7   : > { %v1045_v9 = vsub.f32 1.5, %v1044_v8  ;;  %v944_v36 = vmul.f32 0.5, %v943_v0 }
 0x1a8   : > { %v1025_v5 = vsub.f32 1.5, %v1024_v63  ;;  %v990_v6 = vsel %vm989_vm2, %v1444_v57, %v986_v53 }
 0x1a9   : > { %v1046_v39 = vmul.f32 %v1446_v34, %v1045_v9  ;;  %v1452_v43 = vpop.eup %1451  ;;  %v1095_v50 = vmul.f32 %v1079_v56, %v990_v6  ;;  %v945_v33 = vsub.f32 1.5, %v944_v36 }
 0x1aa   : > { %v1026_v32 = vmul.f32 %v1448_v27, %v1025_v5  ;;  %v1052_v48 = vmul.f32 %v1452_v43, %v2205_v10  ;;  %v1454_v4 = vpop.eup %1453  ;;  %vm1058_vm10 = vweird.f32 %v1452_v43 }
 0x1ab   : > { %v1050_v40 = vsel %vm1049_vm4, %v1446_v34, %v1046_v39  ;;  %v1114_v14 = vmul.f32 %v2047_v45, %v1095_v50  ;;  %v1062_v7 = vmul.f32 %v1454_v4, %v2209_v38  ;;  %v946_v30 = vmul.f32 %v1450_v59, %v945_v33  ;;  %vm1059_vm13 = vmor %vm1057_vm11, %vm1058_vm10 }
 0x1ac   : > { %v1101_v1 = vmul.f32 %v1085_v18, %v1050_v40  ;;  %v1030_v12 = vsel %vm1029_vm6, %v1448_v27, %v1026_v32  ;;  %v1053_v41 = vmul.f32 %v1452_v43, %v1052_v48  ;;  %vm1068_vm12 = vweird.f32 %v1454_v4 }
 0x1ad   : > { %v1099_v61 = vmul.f32 %v1083_v55, %v1030_v12  ;;  %v1134_v11 = vadd.f32 %v2054_v46, %v1114_v14  ;;  %v1063_v20 = vmul.f32 %v1454_v4, %v1062_v7  ;;  %v950_v42 = vsel %vm949_vm9, %v1450_v59, %v946_v30  ;;  %vm1069_vm15 = vmor %vm1067_vm14, %vm1068_vm12 }
 0x1ae   : > { %v1120_v19 = vmul.f32 %v2047_v45, %v1101_v1  ;;  %v1054_v58 = vmul.f32 0.5, %v1053_v41  ;;  %v1091_v57 = vmul.f32 %v1075_v24, %v950_v42 }
 0x1af   : > { %v1118_v29 = vmul.f32 %v2047_v45, %v1099_v61  ;;  %1150 = vst [vmem:[%s2069_s27 + $0x38] sm:$0xff] %v1134_v11  ;;  %v1064_v34 = vmul.f32 0.5, %v1063_v20 }
 0x1b0   : > { %v1140_v13 = vadd.f32 %v2054_v46, %v1120_v19  ;;  %v1055_v31 = vsub.f32 1.5, %v1054_v58  ;;  %v1110_v16 = vmul.f32 %v2047_v45, %v1091_v57 }
 0x1b1   : > { %v1138_v47 = vadd.f32 %v2054_v46, %v1118_v29  ;;  %v1065_v62 = vsub.f32 1.5, %v1064_v34 }
 0x1b2   : > { %1156 = vst [vmem:[%s2069_s27 + $0x68] sm:$0xff] %v1140_v13  ;;  %v1056_v22 = vmul.f32 %v1452_v43, %v1055_v31  ;;  %v1130_v37 = vadd.f32 %v2054_v46, %v1110_v16 }
 0x1b3   : > { %1154 = vst [vmem:[%s2069_s27 + $0x58] sm:$0xff] %v1138_v47  ;;  %v1066_v26 = vmul.f32 %v1454_v4, %v1065_v62 }
 0x1b4   : > { %v1060_v27 = vsel %vm1059_vm13, %v1452_v43, %v1056_v22  ;;  %1146 = vst [vmem:[%s2069_s27 + $0x18] sm:$0xff] %v1130_v37 }
 0x1b5   : > { %v1102_v44 = vmul.f32 %v1086_v2, %v1060_v27  ;;  %v1070_v49 = vsel %vm1069_vm15, %v1454_v4, %v1066_v26 }
 0x1b6   : > { %v1103_v60 = vmul.f32 %v1087_v25, %v1070_v49 }
 0x1b7   : > { %v1121_v28 = vmul.f32 %v2047_v45, %v1102_v44 }
 0x1b8   : > { %v1122_v21 = vmul.f32 %v2047_v45, %v1103_v60 }
 0x1b9   : > { %v1141_v3 = vadd.f32 %v2054_v46, %v1121_v28 }
 0x1ba   : > { %v1142_v23 = vadd.f32 %v2054_v46, %v1122_v21 }
 0x1bb   : > { %1157 = vst [vmem:[%s2069_s27 + $0x70] sm:$0xff] %v1141_v3 }
 0x1bc   : > { %1158 = vst [vmem:[%s2069_s27 + $0x78] sm:$0xff] %v1142_v23 }
 0x1bd   : > { %1542 = shalt.err (!%p1539_p10)
}
 0x1be   : > { %s1592_s8 = smov 128   ;;  %s1593_s21 = smov 8  }
 0x1bf   : > { %1363 = dma.vmem_to_hbm [thread:$0]  (%p1699_p7), %s1173_s15, 2048, %s1175_s0, %s1160_s16, %s1592_s8, %s1592_s8, %s1593_s21  }
 0x1c0 PF: > { %s1189_s22 = sand.u32 1, %s1573_s23   ;;  %p2299_p12 = scmp.ge.s32.totalorder %s1585_s26, 2 }
 0x1c1   : > { %s1190_s27 = scalar_lea.sflag [#allocation6], %s1189_s22 }
 0x1c2   : > { %p1374_p13 = pnand %p2299_p12, %p1667_p6 }
 0x1c4   : > { %p1375_p0 = pneg %p1374_p13 }
 0x1c6   : > { %1568 = dma.done.wait (%p1375_p0), %s1190_s27, 2048  }
 0x1c7   : > { %1570 = vsyncadd (%p1375_p0), %s1190_s27, 4294965248  ;;  %p21_p3 = scmp.ge.s32.totalorder %s1685_s12, 4   ;;  %s2300_s23 = smov %s1577_s24 }
 0x1c8   : > { %s2301_s24 = smov %s1581_s25  ;;  %s2302_s25 = smov %s1695_s17 }
 0x1c9   : > { %s2303_s26 = smov %s1685_s12  ;;  %23 = sbr.rel (!%p21_p3) target bundleno = 8 (0x8), region = 89 }
 0x1ce   :  { %1196 = vsyncpa [#allocation5], 1 }
 0x1cf   :  { %1198 = vsyncpa [#allocation5 + $0x1], 1 }
 0x1d0   :  { %1199 = vsyncpa [#allocation8], 1 }
 0x1d1   :  { %1200 = vsyncpa [#allocation6], 1 }
 0x1d2   :  { %1202 = vsyncpa [#allocation6 + $0x1], 1 }

</bundles_post_ra>
